<compile_context>
chip_gen: v7x
topology: tpu7x:2x2x1
jax: 0.10.0
libtpu: 0.0.40
codegen_flags: <defaults>
</compile_context>

<pallas_src>
import jax
import jax.numpy as jnp
from jax import lax
from jax.experimental import pallas as pl
from jax.experimental.pallas import tpu as pltpu


VMEM_LIMIT_BYTES = 48 * 1024 * 1024       # safe on v5e/v6e (128 MiB) and v7x (64 MiB)
CHUNK_VMEM_BUDGET = 20 * 1024 * 1024      # budget for the streamed (double-buffered) slabs


# ---------------------------------------------------------------------------
# Kernel 1: hoisted input projection, row-tiled lane-dense GEMM.
#   pre = x2d @ W_ih^T   (bf16 operands, f32 MXU accumulation, bf16 output)
# ---------------------------------------------------------------------------
def _gate_proj_kernel(x_ref, w_ref, o_ref):
    o_ref[...] = jnp.dot(
        x_ref[...], w_ref[...], preferred_element_type=jnp.float32
    ).astype(o_ref.dtype)


def run_gate_projection(x2d_bf16, wih_t_bf16, row_tile):
    rows, din = x2d_bf16.shape
    h4 = wih_t_bf16.shape[1]
    n_row_tiles = rows // row_tile        # exact by construction (wrapper pads T)
    return pl.pallas_call(
        _gate_proj_kernel,
        out_shape=jax.ShapeDtypeStruct((rows, h4), jnp.bfloat16),
        grid_spec=pltpu.PrefetchScalarGridSpec(
            num_scalar_prefetch=0,
            grid=(n_row_tiles,),
            in_specs=[
                pl.BlockSpec((row_tile, din), lambda i: (i, 0)),
                # Din is small for this model; if Din were large, add a K grid
                # axis ("arbitrary") with an f32 VMEM accumulator.
                pl.BlockSpec((din, h4), lambda i: (0, 0)),
            ],
            out_specs=pl.BlockSpec((row_tile, h4), lambda i: (i, 0)),
        ),
        compiler_params=pltpu.CompilerParams(
            dimension_semantics=("parallel",),
            vmem_limit_bytes=VMEM_LIMIT_BYTES,
        ),
    )(x2d_bf16, wih_t_bf16)


# ---------------------------------------------------------------------------
# Kernel 2: serial LSTM recurrence over T-chunks (h/c persist across chunks).
# ---------------------------------------------------------------------------
def _make_lstm_kernel(batch_first_out):
    def kernel(pre_ref, whh_ref, bias_ref, out_ref, h_sc, c_sc):
        """One chunk of the time recurrence.

        pre_ref : (Tc, B, 4H) bf16   x @ W_ih^T for this chunk (no bias)
        whh_ref : (H, 4H)     bf16   pre-transposed hidden->hidden weights
        bias_ref: (1, 4H)     f32    b_ih + b_hh
        out_ref : (Tc, B, H) or (B, Tc, H) f32
        h_sc, c_sc : (B, H) f32 VMEM scratch, persistent across grid steps
        """
        tc = pre_ref.shape[0]
        h4 = pre_ref.shape[2]
        h = h4 // 4

        @pl.when(pl.program_id(0) == 0)
        def _():
            h_sc[...] = jnp.zeros_like(h_sc)
            c_sc[...] = jnp.zeros_like(c_sc)

        bias = bias_ref[...]                                   # (1, 4H) f32

        def step(t, carry):
            h_prev, c_prev = carry
            # f32 accumulation: bf16 pre-gates + f32 bias + f32 MXU result.
            gates = (
                pre_ref[t].astype(jnp.float32)
                + bias
                + jnp.dot(h_prev.astype(whh_ref.dtype), whh_ref[...],
                          preferred_element_type=jnp.float32)
            )                                                  # (B, 4H) f32
            # PyTorch gate order along 4H: i, f, g, o.
            # Per-slice activations (no full-width where over both tanh+sigmoid).
            if_act = jax.nn.sigmoid(gates[:, 0:2 * h])         # i,f together
            g_g = jnp.tanh(gates[:, 2 * h:3 * h])
            o_g = jax.nn.sigmoid(gates[:, 3 * h:4 * h])
            i_g = if_act[:, 0:h]
            f_g = if_act[:, h:2 * h]
            c_new = f_g * c_prev + i_g * g_g
            h_new = o_g * jnp.tanh(c_new)
            if batch_first_out:
                out_ref[:, pl.ds(t, 1), :] = h_new[:, None, :]
            else:
                out_ref[t] = h_new
            return h_new, c_new

        h_fin, c_fin = lax.fori_loop(0, tc, step, (h_sc[...], c_sc[...]),
                                     unroll=min(int(tc), 8))
        h_sc[...] = h_fin
        c_sc[...] = c_fin

    return kernel


def run_lstm_recurrence(pre_tm, whh_t_bf16, bias_f32, chunk, batch_first_out):
    t_pad, batch, h4 = pre_tm.shape
    hidden = h4 // 4
    n_chunks = t_pad // chunk             # exact by construction

    if batch_first_out:
        out_shape = jax.ShapeDtypeStruct((batch, t_pad, hidden), jnp.float32)
        out_spec = pl.BlockSpec((batch, chunk, hidden), lambda t: (0, t, 0))
    else:
        out_shape = jax.ShapeDtypeStruct((t_pad, batch, hidden), jnp.float32)
        out_spec = pl.BlockSpec((chunk, batch, hidden), lambda t: (t, 0, 0))

    return pl.pallas_call(
        _make_lstm_kernel(batch_first_out),
        out_shape=out_shape,
        grid_spec=pltpu.PrefetchScalarGridSpec(
            num_scalar_prefetch=0,
            grid=(n_chunks,),
            in_specs=[
                pl.BlockSpec((chunk, batch, h4), lambda t: (t, 0, 0)),
                pl.BlockSpec((hidden, h4), lambda t: (0, 0)),
                pl.BlockSpec((1, h4), lambda t: (0, 0)),
            ],
            out_specs=out_spec,
            scratch_shapes=[
                pltpu.VMEM((batch, hidden), jnp.float32),   # h state
                pltpu.VMEM((batch, hidden), jnp.float32),   # c state
            ],
        ),
        compiler_params=pltpu.CompilerParams(
            dimension_semantics=("arbitrary",),   # time recurrence is serial
            vmem_limit_bytes=VMEM_LIMIT_BYTES,
        ),
    )(pre_tm, whh_t_bf16, bias_f32)


def _pick_chunk(t_len, batch, hidden):
    """Pick the time-chunk length and the padded sequence length.

    The streamed slabs per timestep in the recurrence (double-buffered) are the
    bf16 pre-gates (B,4H) and the f32 output (B,H).  The chunk is sized so these
    fit CHUNK_VMEM_BUDGET; weights / scratch are small and excluded.  The chunk
    is either the whole sequence (single grid step) or a multiple of 16 so that
    blocked second-to-minor dims satisfy TPU tiling.
    """
    per_t = 2 * batch * (4 * hidden * 2 + hidden * 4)   # bytes, double-buffered
    max_chunk = max(1, CHUNK_VMEM_BUDGET // per_t)
    if t_len <= max_chunk:
        return t_len, t_len                               # one chunk, no padding
    chunk = max(16, (max_chunk // 16) * 16)
    n_chunks = -(-t_len // chunk)                          # cdiv
    return chunk, n_chunks * chunk


# ---------------------------------------------------------------------------
# Parameters & forward pass (matches nn.Embedding + nn.LSTM(batch_first=True))
# ---------------------------------------------------------------------------
def init_encoder_params(key, vocab_size, embedding_dim, latent_dim, num_layers):
    """Deterministic synthetic params matching nn.Embedding / nn.LSTM shapes."""
    keys = jax.random.split(key, 1 + 4 * num_layers)
    params = {}
    params["embedding"] = jax.random.normal(
        keys[0], (vocab_size, embedding_dim), jnp.float32)
    scale = 1.0 / jnp.sqrt(jnp.float32(latent_dim))
    layers = []
    for l in range(num_layers):
        din = embedding_dim if l == 0 else latent_dim
        k = keys[1 + 4 * l:1 + 4 * (l + 1)]
        layers.append({
            "w_ih": jax.random.uniform(k[0], (4 * latent_dim, din),
                                       jnp.float32, -scale, scale),
            "w_hh": jax.random.uniform(k[1], (4 * latent_dim, latent_dim),
                                       jnp.float32, -scale, scale),
            "b_ih": jax.random.uniform(k[2], (4 * latent_dim,),
                                       jnp.float32, -scale, scale),
            "b_hh": jax.random.uniform(k[3], (4 * latent_dim,),
                                       jnp.float32, -scale, scale),
        })
    params["lstm"] = layers
    return params


def encoder_forward(params, token_ids):
    """token_ids: (B, T) int32 -> (B, T, latent_dim) f32 (PyTorch semantics)."""
    b, t = token_ids.shape
    num_layers = len(params["lstm"])
    latent_dim = params["lstm"][0]["w_hh"].shape[1]

    # Chunking is a function of (T, B, H) only -> constant across layers.
    chunk, t_pad = _pick_chunk(t, b, latent_dim)

    # Embedding gather directly in time-major order, bf16 end-to-end
    # (the data is cast for the MXU anyway; halves the gather HBM traffic).
    emb_bf16 = params["embedding"].astype(jnp.bfloat16)
    x_tm = jnp.take(emb_bf16, token_ids.T, axis=0)                 # (T, B, E) bf16
    if t_pad != t:
        # Zero-pad the tail of the time axis; padded steps only influence later
        # (also padded) steps, which are sliced off at the end.
        x_tm = jnp.pad(x_tm, ((0, t_pad - t), (0, 0), (0, 0)))

    out = None
    for li, layer in enumerate(params["lstm"]):
        h4, din = layer["w_ih"].shape
        last = li == num_layers - 1

        # One-time wrapper-side weight prep: (K, N) layout for the MXU, bf16.
        wih_t = jnp.transpose(layer["w_ih"]).astype(jnp.bfloat16)  # (Din, 4H)
        whh_t = jnp.transpose(layer["w_hh"]).astype(jnp.bfloat16)  # (H, 4H)
        bias = (layer["b_ih"] + layer["b_hh"]).reshape(1, h4).astype(jnp.float32)

        # (1) Hoisted input projection: row-tiled GEMM over all T_pad*B rows,
        #     bf16 pre-gates (halves the HBM round trip vs f32).
        x2d = x_tm.reshape(t_pad * b, din).astype(jnp.bfloat16)
        pre = run_gate_projection(x2d, wih_t, row_tile=chunk * b)  # (T_pad*B, 4H)
        pre_tm = pre.reshape(t_pad, b, h4)                          # free reshape

        # (2) Serial recurrence, VMEM-resident per chunk. Last layer is emitted
        #     batch-first straight from the kernel (no wrapper transpose).
        out = run_lstm_recurrence(pre_tm, whh_t, bias, chunk,
                                  batch_first_out=last)
        if not last:
            x_tm = out                                             # (T_pad, B, H) f32

    return out[:, :t, :]                                           # (B, T, H) f32


if __name__ == "__main__":
    vocab_size = 64
    embedding_dim = 32
    latent_dim = 32
    num_layers = 2
    batch = 2
    seq_len = 8

    key = jax.random.PRNGKey(0)
    k_params, k_tokens = jax.random.split(key)
    params = init_encoder_params(k_params, vocab_size, embedding_dim,
                                 latent_dim, num_layers)
    token_ids = jax.random.randint(k_tokens, (batch, seq_len), 0, vocab_size,
                                   dtype=jnp.int32)

    out = jax.jit(encoder_forward)(params, token_ids)
    out = jax.block_until_ready(out)
    assert out.shape == (batch, seq_len, latent_dim)
    assert out.dtype == jnp.float32
    assert bool(jnp.all(jnp.isfinite(out)))
    print("KERNEL_OK")
</pallas_src>

<mosaic_0001>
module attributes {stable_mosaic.version = 11 : i64} {
  func.func @_gate_proj_kernel(%arg0: i32, %arg1: memref<16x32xbf16, #tpu.memory_space<vmem>>, %arg2: memref<32x128xbf16, #tpu.memory_space<vmem>>, %arg3: memref<16x128xbf16, #tpu.memory_space<vmem>>) attributes {dimension_semantics = [#tpu.dimension_semantics<parallel>], iteration_bounds = array<i64: 1>, scalar_prefetch = 0 : i64, scratch_operands = 0 : i64, tpu.core_type = #tpu.core_type<tc>, window_params = [{transform_indices = @transform_0, window_bounds = array<i64: 16, 32>}, {pipeline_mode = #tpu.pipeline_mode<synchronous>, transform_indices = @transform_1, window_bounds = array<i64: 32, 128>}, {transform_indices = @transform_2, window_bounds = array<i64: 16, 128>}]} {
    %c0 = arith.constant 0 : index
    %c0_0 = arith.constant 0 : index
    %0 = vector.load %arg1[%c0, %c0_0] : memref<16x32xbf16, #tpu.memory_space<vmem>>, vector<16x32xbf16>
    %c0_1 = arith.constant 0 : index
    %c0_2 = arith.constant 0 : index
    %1 = vector.load %arg2[%c0_1, %c0_2] : memref<32x128xbf16, #tpu.memory_space<vmem>>, vector<32x128xbf16>
    %cst = arith.constant dense<0.000000e+00> : vector<16x128xf32>
    %2 = tpu.matmul %0, %1, %cst {dimension_numbers = #tpu.dot_dimension_numbers<[1], [0], [0], [1], [0, 0, 1, 1], [], []>} : vector<16x32xbf16>, vector<32x128xbf16>, vector<16x128xf32> -> vector<16x128xf32>
    %3 = arith.truncf %2 : vector<16x128xf32> to vector<16x128xbf16>
    %c0_3 = arith.constant 0 : index
    %c0_4 = arith.constant 0 : index
    %4 = vector.load %arg3[%c0_3, %c0_4] : memref<16x128xbf16, #tpu.memory_space<vmem>>, vector<16x128xbf16>
    tpu.vector_store %arg3[%c0_3, %c0_4], %3 {strides = array<i32>} : memref<16x128xbf16, #tpu.memory_space<vmem>>, vector<16x128xbf16>,
    return
  }
  func.func @transform_0(%arg0: i32) -> (i32, i32) {
    %c0_i32 = arith.constant 0 : i32
    %c0_i32_0 = arith.constant 0 : i32
    return %arg0, %c0_i32 : i32, i32
  }
  func.func @transform_1(%arg0: i32) -> (i32, i32) {
    %c0_i32 = arith.constant 0 : i32
    %c0_i32_0 = arith.constant 0 : i32
    %c0_i32_1 = arith.constant 0 : i32
    return %c0_i32, %c0_i32_0 : i32, i32
  }
  func.func @transform_2(%arg0: i32) -> (i32, i32) {
    %c0_i32 = arith.constant 0 : i32
    %c0_i32_0 = arith.constant 0 : i32
    return %arg0, %c0_i32 : i32, i32
  }
}

module attributes {stable_mosaic.version = 11 : i64} {
  func.func @kernel(%arg0: i32, %arg1: memref<8x2x128xbf16, #tpu.memory_space<vmem>>, %arg2: memref<32x128xbf16, #tpu.memory_space<vmem>>, %arg3: memref<1x128xf32, #tpu.memory_space<vmem>>, %arg4: memref<8x2x32xf32, #tpu.memory_space<vmem>>, %arg5: memref<2x32xf32, #tpu.memory_space<vmem>>, %arg6: memref<2x32xf32, #tpu.memory_space<vmem>>) attributes {dimension_semantics = [#tpu.dimension_semantics<arbitrary>], iteration_bounds = array<i64: 1>, scalar_prefetch = 0 : i64, scratch_operands = 2 : i64, tpu.core_type = #tpu.core_type<tc>, window_params = [{transform_indices = @transform_0, window_bounds = array<i64: 8, 2, 128>}, {pipeline_mode = #tpu.pipeline_mode<synchronous>, transform_indices = @transform_1, window_bounds = array<i64: 32, 128>}, {pipeline_mode = #tpu.pipeline_mode<synchronous>, transform_indices = @transform_2, window_bounds = array<i64: 1, 128>}, {transform_indices = @transform_3, window_bounds = array<i64: 8, 2, 32>}]} {
    %c0_i32 = arith.constant 0 : i32
    %0 = arith.cmpi eq, %arg0, %c0_i32 : i32
    %1 = arith.extui %0 : i1 to i32
    %c0_i32_0 = arith.constant 0 : i32
    %2 = arith.cmpi ne, %1, %c0_i32_0 : i32
    scf.if %2 {
      %cst_82 = arith.constant 0.000000e+00 : f32
      %288 = vector.broadcast %cst_82 : f32 to vector<2x32xf32>
      %c0_83 = arith.constant 0 : index
      %c0_84 = arith.constant 0 : index
      %289 = vector.load %arg5[%c0_83, %c0_84] : memref<2x32xf32, #tpu.memory_space<vmem>>, vector<2x32xf32>
      tpu.vector_store %arg5[%c0_83, %c0_84], %288 {strides = array<i32>} : memref<2x32xf32, #tpu.memory_space<vmem>>, vector<2x32xf32>,
      %cst_85 = arith.constant 0.000000e+00 : f32
      %290 = vector.broadcast %cst_85 : f32 to vector<2x32xf32>
      %c0_86 = arith.constant 0 : index
      %c0_87 = arith.constant 0 : index
      %291 = vector.load %arg6[%c0_86, %c0_87] : memref<2x32xf32, #tpu.memory_space<vmem>>, vector<2x32xf32>
      tpu.vector_store %arg6[%c0_86, %c0_87], %290 {strides = array<i32>} : memref<2x32xf32, #tpu.memory_space<vmem>>, vector<2x32xf32>,
    } else {
    }
    %c0 = arith.constant 0 : index
    %c0_1 = arith.constant 0 : index
    %3 = vector.load %arg3[%c0, %c0_1] : memref<1x128xf32, #tpu.memory_space<vmem>>, vector<1x128xf32>
    %c0_2 = arith.constant 0 : index
    %c0_3 = arith.constant 0 : index
    %4 = vector.load %arg5[%c0_2, %c0_3] : memref<2x32xf32, #tpu.memory_space<vmem>>, vector<2x32xf32>
    %c0_4 = arith.constant 0 : index
    %c0_5 = arith.constant 0 : index
    %5 = vector.load %arg6[%c0_4, %c0_5] : memref<2x32xf32, #tpu.memory_space<vmem>>, vector<2x32xf32>
    %c0_i32_6 = arith.constant 0 : i32
    %6 = arith.index_cast %c0_i32_6 : i32 to index
    %c0_7 = arith.constant 0 : index
    %c0_8 = arith.constant 0 : index
    %7 = vector.load %arg1[%6, %c0_7, %c0_8] : memref<8x2x128xbf16, #tpu.memory_space<vmem>>, vector<1x2x128xbf16>
    %8 = vector.shape_cast %7 : vector<1x2x128xbf16> to vector<2x128xbf16>
    %9 = arith.extf %8 : vector<2x128xbf16> to vector<2x128xf32>
    %10 = vector.broadcast %3 : vector<1x128xf32> to vector<2x128xf32>
    %11 = arith.addf %9, %10 : vector<2x128xf32>
    %12 = arith.truncf %4 : vector<2x32xf32> to vector<2x32xbf16>
    %c0_9 = arith.constant 0 : index
    %c0_10 = arith.constant 0 : index
    %13 = vector.load %arg2[%c0_9, %c0_10] : memref<32x128xbf16, #tpu.memory_space<vmem>>, vector<32x128xbf16>
    %cst = arith.constant dense<0.000000e+00> : vector<2x128xf32>
    %14 = tpu.matmul %12, %13, %cst {dimension_numbers = #tpu.dot_dimension_numbers<[1], [0], [0], [1], [0, 0, 1, 1], [], []>} : vector<2x32xbf16>, vector<32x128xbf16>, vector<2x128xf32> -> vector<2x128xf32>
    %15 = arith.addf %11, %14 : vector<2x128xf32>
    %16 = vector.extract_strided_slice %15 {offsets = [0, 0], sizes = [2, 64], strides = [1, 1]} : vector<2x128xf32> to vector<2x64xf32>
    %17 = arith.negf %16 : vector<2x64xf32>
    %18 = math.exp %17 : vector<2x64xf32>
    %cst_11 = arith.constant 1.000000e+00 : f32
    %19 = vector.broadcast %cst_11 : f32 to vector<2x64xf32>
    %20 = arith.addf %19, %18 : vector<2x64xf32>
    %21 = arith.divf %19, %20 : vector<2x64xf32>
    %22 = vector.extract_strided_slice %15 {offsets = [0, 64], sizes = [2, 32], strides = [1, 1]} : vector<2x128xf32> to vector<2x32xf32>
    %23 = math.tanh %22 : vector<2x32xf32>
    %24 = vector.extract_strided_slice %15 {offsets = [0, 96], sizes = [2, 32], strides = [1, 1]} : vector<2x128xf32> to vector<2x32xf32>
    %25 = arith.negf %24 : vector<2x32xf32>
    %26 = math.exp %25 : vector<2x32xf32>
    %cst_12 = arith.constant 1.000000e+00 : f32
    %27 = vector.broadcast %cst_12 : f32 to vector<2x32xf32>
    %28 = arith.addf %27, %26 : vector<2x32xf32>
    %29 = arith.divf %27, %28 : vector<2x32xf32>
    %30 = vector.extract_strided_slice %21 {offsets = [0, 0], sizes = [2, 32], strides = [1, 1]} : vector<2x64xf32> to vector<2x32xf32>
    %31 = vector.extract_strided_slice %21 {offsets = [0, 32], sizes = [2, 32], strides = [1, 1]} : vector<2x64xf32> to vector<2x32xf32>
    %32 = arith.mulf %31, %5 : vector<2x32xf32>
    %33 = arith.mulf %30, %23 : vector<2x32xf32>
    %34 = arith.addf %32, %33 : vector<2x32xf32>
    %35 = math.tanh %34 : vector<2x32xf32>
    %36 = arith.mulf %29, %35 : vector<2x32xf32>
    %37 = arith.index_cast %c0_i32_6 : i32 to index
    %c0_13 = arith.constant 0 : index
    %c0_14 = arith.constant 0 : index
    %38 = vector.load %arg4[%37, %c0_13, %c0_14] : memref<8x2x32xf32, #tpu.memory_space<vmem>>, vector<1x2x32xf32>
    %39 = vector.shape_cast %38 : vector<1x2x32xf32> to vector<2x32xf32>
    %40 = vector.shape_cast %36 : vector<2x32xf32> to vector<1x2x32xf32>
    tpu.vector_store %arg4[%37, %c0_13, %c0_14], %40 {strides = array<i32>} : memref<8x2x32xf32, #tpu.memory_space<vmem>>, vector<1x2x32xf32>,
    %c1_i32 = arith.constant 1 : i32
    %41 = arith.index_cast %c1_i32 : i32 to index
    %c0_15 = arith.constant 0 : index
    %c0_16 = arith.constant 0 : index
    %42 = vector.load %arg1[%41, %c0_15, %c0_16] : memref<8x2x128xbf16, #tpu.memory_space<vmem>>, vector<1x2x128xbf16>
    %43 = vector.shape_cast %42 : vector<1x2x128xbf16> to vector<2x128xbf16>
    %44 = arith.extf %43 : vector<2x128xbf16> to vector<2x128xf32>
    %45 = vector.broadcast %3 : vector<1x128xf32> to vector<2x128xf32>
    %46 = arith.addf %44, %45 : vector<2x128xf32>
    %47 = arith.truncf %36 : vector<2x32xf32> to vector<2x32xbf16>
    %c0_17 = arith.constant 0 : index
    %c0_18 = arith.constant 0 : index
    %48 = vector.load %arg2[%c0_17, %c0_18] : memref<32x128xbf16, #tpu.memory_space<vmem>>, vector<32x128xbf16>
    %cst_19 = arith.constant dense<0.000000e+00> : vector<2x128xf32>
    %49 = tpu.matmul %47, %48, %cst_19 {dimension_numbers = #tpu.dot_dimension_numbers<[1], [0], [0], [1], [0, 0, 1, 1], [], []>} : vector<2x32xbf16>, vector<32x128xbf16>, vector<2x128xf32> -> vector<2x128xf32>
    %50 = arith.addf %46, %49 : vector<2x128xf32>
    %51 = vector.extract_strided_slice %50 {offsets = [0, 0], sizes = [2, 64], strides = [1, 1]} : vector<2x128xf32> to vector<2x64xf32>
    %52 = arith.negf %51 : vector<2x64xf32>
    %53 = math.exp %52 : vector<2x64xf32>
    %cst_20 = arith.constant 1.000000e+00 : f32
    %54 = vector.broadcast %cst_20 : f32 to vector<2x64xf32>
    %55 = arith.addf %54, %53 : vector<2x64xf32>
    %56 = arith.divf %54, %55 : vector<2x64xf32>
    %57 = vector.extract_strided_slice %50 {offsets = [0, 64], sizes = [2, 32], strides = [1, 1]} : vector<2x128xf32> to vector<2x32xf32>
    %58 = math.tanh %57 : vector<2x32xf32>
    %59 = vector.extract_strided_slice %50 {offsets = [0, 96], sizes = [2, 32], strides = [1, 1]} : vector<2x128xf32> to vector<2x32xf32>
    %60 = arith.negf %59 : vector<2x32xf32>
    %61 = math.exp %60 : vector<2x32xf32>
    %cst_21 = arith.constant 1.000000e+00 : f32
    %62 = vector.broadcast %cst_21 : f32 to vector<2x32xf32>
    %63 = arith.addf %62, %61 : vector<2x32xf32>
    %64 = arith.divf %62, %63 : vector<2x32xf32>
    %65 = vector.extract_strided_slice %56 {offsets = [0, 0], sizes = [2, 32], strides = [1, 1]} : vector<2x64xf32> to vector<2x32xf32>
    %66 = vector.extract_strided_slice %56 {offsets = [0, 32], sizes = [2, 32], strides = [1, 1]} : vector<2x64xf32> to vector<2x32xf32>
    %67 = arith.mulf %66, %34 : vector<2x32xf32>
    %68 = arith.mulf %65, %58 : vector<2x32xf32>
    %69 = arith.addf %67, %68 : vector<2x32xf32>
    %70 = math.tanh %69 : vector<2x32xf32>
    %71 = arith.mulf %64, %70 : vector<2x32xf32>
    %72 = arith.index_cast %c1_i32 : i32 to index
    %c0_22 = arith.constant 0 : index
    %c0_23 = arith.constant 0 : index
    %73 = vector.load %arg4[%72, %c0_22, %c0_23] : memref<8x2x32xf32, #tpu.memory_space<vmem>>, vector<1x2x32xf32>
    %74 = vector.shape_cast %73 : vector<1x2x32xf32> to vector<2x32xf32>
    %75 = vector.shape_cast %71 : vector<2x32xf32> to vector<1x2x32xf32>
    tpu.vector_store %arg4[%72, %c0_22, %c0_23], %75 {strides = array<i32>} : memref<8x2x32xf32, #tpu.memory_space<vmem>>, vector<1x2x32xf32>,
    %c2_i32 = arith.constant 2 : i32
    %76 = arith.index_cast %c2_i32 : i32 to index
    %c0_24 = arith.constant 0 : index
    %c0_25 = arith.constant 0 : index
    %77 = vector.load %arg1[%76, %c0_24, %c0_25] : memref<8x2x128xbf16, #tpu.memory_space<vmem>>, vector<1x2x128xbf16>
    %78 = vector.shape_cast %77 : vector<1x2x128xbf16> to vector<2x128xbf16>
    %79 = arith.extf %78 : vector<2x128xbf16> to vector<2x128xf32>
    %80 = vector.broadcast %3 : vector<1x128xf32> to vector<2x128xf32>
    %81 = arith.addf %79, %80 : vector<2x128xf32>
    %82 = arith.truncf %71 : vector<2x32xf32> to vector<2x32xbf16>
    %c0_26 = arith.constant 0 : index
    %c0_27 = arith.constant 0 : index
    %83 = vector.load %arg2[%c0_26, %c0_27] : memref<32x128xbf16, #tpu.memory_space<vmem>>, vector<32x128xbf16>
    %cst_28 = arith.constant dense<0.000000e+00> : vector<2x128xf32>
    %84 = tpu.matmul %82, %83, %cst_28 {dimension_numbers = #tpu.dot_dimension_numbers<[1], [0], [0], [1], [0, 0, 1, 1], [], []>} : vector<2x32xbf16>, vector<32x128xbf16>, vector<2x128xf32> -> vector<2x128xf32>
    %85 = arith.addf %81, %84 : vector<2x128xf32>
    %86 = vector.extract_strided_slice %85 {offsets = [0, 0], sizes = [2, 64], strides = [1, 1]} : vector<2x128xf32> to vector<2x64xf32>
    %87 = arith.negf %86 : vector<2x64xf32>
    %88 = math.exp %87 : vector<2x64xf32>
    %cst_29 = arith.constant 1.000000e+00 : f32
    %89 = vector.broadcast %cst_29 : f32 to vector<2x64xf32>
    %90 = arith.addf %89, %88 : vector<2x64xf32>
    %91 = arith.divf %89, %90 : vector<2x64xf32>
    %92 = vector.extract_strided_slice %85 {offsets = [0, 64], sizes = [2, 32], strides = [1, 1]} : vector<2x128xf32> to vector<2x32xf32>
    %93 = math.tanh %92 : vector<2x32xf32>
    %94 = vector.extract_strided_slice %85 {offsets = [0, 96], sizes = [2, 32], strides = [1, 1]} : vector<2x128xf32> to vector<2x32xf32>
    %95 = arith.negf %94 : vector<2x32xf32>
    %96 = math.exp %95 : vector<2x32xf32>
    %cst_30 = arith.constant 1.000000e+00 : f32
    %97 = vector.broadcast %cst_30 : f32 to vector<2x32xf32>
    %98 = arith.addf %97, %96 : vector<2x32xf32>
    %99 = arith.divf %97, %98 : vector<2x32xf32>
    %100 = vector.extract_strided_slice %91 {offsets = [0, 0], sizes = [2, 32], strides = [1, 1]} : vector<2x64xf32> to vector<2x32xf32>
    %101 = vector.extract_strided_slice %91 {offsets = [0, 32], sizes = [2, 32], strides = [1, 1]} : vector<2x64xf32> to vector<2x32xf32>
    %102 = arith.mulf %101, %69 : vector<2x32xf32>
    %103 = arith.mulf %100, %93 : vector<2x32xf32>
    %104 = arith.addf %102, %103 : vector<2x32xf32>
    %105 = math.tanh %104 : vector<2x32xf32>
    %106 = arith.mulf %99, %105 : vector<2x32xf32>
    %107 = arith.index_cast %c2_i32 : i32 to index
    %c0_31 = arith.constant 0 : index
    %c0_32 = arith.constant 0 : index
    %108 = vector.load %arg4[%107, %c0_31, %c0_32] : memref<8x2x32xf32, #tpu.memory_space<vmem>>, vector<1x2x32xf32>
    %109 = vector.shape_cast %108 : vector<1x2x32xf32> to vector<2x32xf32>
    %110 = vector.shape_cast %106 : vector<2x32xf32> to vector<1x2x32xf32>
    tpu.vector_store %arg4[%107, %c0_31, %c0_32], %110 {strides = array<i32>} : memref<8x2x32xf32, #tpu.memory_space<vmem>>, vector<1x2x32xf32>,
    %c3_i32 = arith.constant 3 : i32
    %111 = arith.index_cast %c3_i32 : i32 to index
    %c0_33 = arith.constant 0 : index
    %c0_34 = arith.constant 0 : index
    %112 = vector.load %arg1[%111, %c0_33, %c0_34] : memref<8x2x128xbf16, #tpu.memory_space<vmem>>, vector<1x2x128xbf16>
    %113 = vector.shape_cast %112 : vector<1x2x128xbf16> to vector<2x128xbf16>
    %114 = arith.extf %113 : vector<2x128xbf16> to vector<2x128xf32>
    %115 = vector.broadcast %3 : vector<1x128xf32> to vector<2x128xf32>
    %116 = arith.addf %114, %115 : vector<2x128xf32>
    %117 = arith.truncf %106 : vector<2x32xf32> to vector<2x32xbf16>
    %c0_35 = arith.constant 0 : index
    %c0_36 = arith.constant 0 : index
    %118 = vector.load %arg2[%c0_35, %c0_36] : memref<32x128xbf16, #tpu.memory_space<vmem>>, vector<32x128xbf16>
    %cst_37 = arith.constant dense<0.000000e+00> : vector<2x128xf32>
    %119 = tpu.matmul %117, %118, %cst_37 {dimension_numbers = #tpu.dot_dimension_numbers<[1], [0], [0], [1], [0, 0, 1, 1], [], []>} : vector<2x32xbf16>, vector<32x128xbf16>, vector<2x128xf32> -> vector<2x128xf32>
    %120 = arith.addf %116, %119 : vector<2x128xf32>
    %121 = vector.extract_strided_slice %120 {offsets = [0, 0], sizes = [2, 64], strides = [1, 1]} : vector<2x128xf32> to vector<2x64xf32>
    %122 = arith.negf %121 : vector<2x64xf32>
    %123 = math.exp %122 : vector<2x64xf32>
    %cst_38 = arith.constant 1.000000e+00 : f32
    %124 = vector.broadcast %cst_38 : f32 to vector<2x64xf32>
    %125 = arith.addf %124, %123 : vector<2x64xf32>
    %126 = arith.divf %124, %125 : vector<2x64xf32>
    %127 = vector.extract_strided_slice %120 {offsets = [0, 64], sizes = [2, 32], strides = [1, 1]} : vector<2x128xf32> to vector<2x32xf32>
    %128 = math.tanh %127 : vector<2x32xf32>
    %129 = vector.extract_strided_slice %120 {offsets = [0, 96], sizes = [2, 32], strides = [1, 1]} : vector<2x128xf32> to vector<2x32xf32>
    %130 = arith.negf %129 : vector<2x32xf32>
    %131 = math.exp %130 : vector<2x32xf32>
    %cst_39 = arith.constant 1.000000e+00 : f32
    %132 = vector.broadcast %cst_39 : f32 to vector<2x32xf32>
    %133 = arith.addf %132, %131 : vector<2x32xf32>
    %134 = arith.divf %132, %133 : vector<2x32xf32>
    %135 = vector.extract_strided_slice %126 {offsets = [0, 0], sizes = [2, 32], strides = [1, 1]} : vector<2x64xf32> to vector<2x32xf32>
    %136 = vector.extract_strided_slice %126 {offsets = [0, 32], sizes = [2, 32], strides = [1, 1]} : vector<2x64xf32> to vector<2x32xf32>
    %137 = arith.mulf %136, %104 : vector<2x32xf32>
    %138 = arith.mulf %135, %128 : vector<2x32xf32>
    %139 = arith.addf %137, %138 : vector<2x32xf32>
    %140 = math.tanh %139 : vector<2x32xf32>
    %141 = arith.mulf %134, %140 : vector<2x32xf32>
    %142 = arith.index_cast %c3_i32 : i32 to index
    %c0_40 = arith.constant 0 : index
    %c0_41 = arith.constant 0 : index
    %143 = vector.load %arg4[%142, %c0_40, %c0_41] : memref<8x2x32xf32, #tpu.memory_space<vmem>>, vector<1x2x32xf32>
    %144 = vector.shape_cast %143 : vector<1x2x32xf32> to vector<2x32xf32>
    %145 = vector.shape_cast %141 : vector<2x32xf32> to vector<1x2x32xf32>
    tpu.vector_store %arg4[%142, %c0_40, %c0_41], %145 {strides = array<i32>} : memref<8x2x32xf32, #tpu.memory_space<vmem>>, vector<1x2x32xf32>,
    %c4_i32 = arith.constant 4 : i32
    %146 = arith.index_cast %c4_i32 : i32 to index
    %c0_42 = arith.constant 0 : index
    %c0_43 = arith.constant 0 : index
    %147 = vector.load %arg1[%146, %c0_42, %c0_43] : memref<8x2x128xbf16, #tpu.memory_space<vmem>>, vector<1x2x128xbf16>
    %148 = vector.shape_cast %147 : vector<1x2x128xbf16> to vector<2x128xbf16>
    %149 = arith.extf %148 : vector<2x128xbf16> to vector<2x128xf32>
    %150 = vector.broadcast %3 : vector<1x128xf32> to vector<2x128xf32>
    %151 = arith.addf %149, %150 : vector<2x128xf32>
    %152 = arith.truncf %141 : vector<2x32xf32> to vector<2x32xbf16>
    %c0_44 = arith.constant 0 : index
    %c0_45 = arith.constant 0 : index
    %153 = vector.load %arg2[%c0_44, %c0_45] : memref<32x128xbf16, #tpu.memory_space<vmem>>, vector<32x128xbf16>
    %cst_46 = arith.constant dense<0.000000e+00> : vector<2x128xf32>
    %154 = tpu.matmul %152, %153, %cst_46 {dimension_numbers = #tpu.dot_dimension_numbers<[1], [0], [0], [1], [0, 0, 1, 1], [], []>} : vector<2x32xbf16>, vector<32x128xbf16>, vector<2x128xf32> -> vector<2x128xf32>
    %155 = arith.addf %151, %154 : vector<2x128xf32>
    %156 = vector.extract_strided_slice %155 {offsets = [0, 0], sizes = [2, 64], strides = [1, 1]} : vector<2x128xf32> to vector<2x64xf32>
    %157 = arith.negf %156 : vector<2x64xf32>
    %158 = math.exp %157 : vector<2x64xf32>
    %cst_47 = arith.constant 1.000000e+00 : f32
    %159 = vector.broadcast %cst_47 : f32 to vector<2x64xf32>
    %160 = arith.addf %159, %158 : vector<2x64xf32>
    %161 = arith.divf %159, %160 : vector<2x64xf32>
    %162 = vector.extract_strided_slice %155 {offsets = [0, 64], sizes = [2, 32], strides = [1, 1]} : vector<2x128xf32> to vector<2x32xf32>
    %163 = math.tanh %162 : vector<2x32xf32>
    %164 = vector.extract_strided_slice %155 {offsets = [0, 96], sizes = [2, 32], strides = [1, 1]} : vector<2x128xf32> to vector<2x32xf32>
    %165 = arith.negf %164 : vector<2x32xf32>
    %166 = math.exp %165 : vector<2x32xf32>
    %cst_48 = arith.constant 1.000000e+00 : f32
    %167 = vector.broadcast %cst_48 : f32 to vector<2x32xf32>
    %168 = arith.addf %167, %166 : vector<2x32xf32>
    %169 = arith.divf %167, %168 : vector<2x32xf32>
    %170 = vector.extract_strided_slice %161 {offsets = [0, 0], sizes = [2, 32], strides = [1, 1]} : vector<2x64xf32> to vector<2x32xf32>
    %171 = vector.extract_strided_slice %161 {offsets = [0, 32], sizes = [2, 32], strides = [1, 1]} : vector<2x64xf32> to vector<2x32xf32>
    %172 = arith.mulf %171, %139 : vector<2x32xf32>
    %173 = arith.mulf %170, %163 : vector<2x32xf32>
    %174 = arith.addf %172, %173 : vector<2x32xf32>
    %175 = math.tanh %174 : vector<2x32xf32>
    %176 = arith.mulf %169, %175 : vector<2x32xf32>
    %177 = arith.index_cast %c4_i32 : i32 to index
    %c0_49 = arith.constant 0 : index
    %c0_50 = arith.constant 0 : index
    %178 = vector.load %arg4[%177, %c0_49, %c0_50] : memref<8x2x32xf32, #tpu.memory_space<vmem>>, vector<1x2x32xf32>
    %179 = vector.shape_cast %178 : vector<1x2x32xf32> to vector<2x32xf32>
    %180 = vector.shape_cast %176 : vector<2x32xf32> to vector<1x2x32xf32>
    tpu.vector_store %arg4[%177, %c0_49, %c0_50], %180 {strides = array<i32>} : memref<8x2x32xf32, #tpu.memory_space<vmem>>, vector<1x2x32xf32>,
    %c5_i32 = arith.constant 5 : i32
    %181 = arith.index_cast %c5_i32 : i32 to index
    %c0_51 = arith.constant 0 : index
    %c0_52 = arith.constant 0 : index
    %182 = vector.load %arg1[%181, %c0_51, %c0_52] : memref<8x2x128xbf16, #tpu.memory_space<vmem>>, vector<1x2x128xbf16>
    %183 = vector.shape_cast %182 : vector<1x2x128xbf16> to vector<2x128xbf16>
    %184 = arith.extf %183 : vector<2x128xbf16> to vector<2x128xf32>
    %185 = vector.broadcast %3 : vector<1x128xf32> to vector<2x128xf32>
    %186 = arith.addf %184, %185 : vector<2x128xf32>
    %187 = arith.truncf %176 : vector<2x32xf32> to vector<2x32xbf16>
    %c0_53 = arith.constant 0 : index
    %c0_54 = arith.constant 0 : index
    %188 = vector.load %arg2[%c0_53, %c0_54] : memref<32x128xbf16, #tpu.memory_space<vmem>>, vector<32x128xbf16>
    %cst_55 = arith.constant dense<0.000000e+00> : vector<2x128xf32>
    %189 = tpu.matmul %187, %188, %cst_55 {dimension_numbers = #tpu.dot_dimension_numbers<[1], [0], [0], [1], [0, 0, 1, 1], [], []>} : vector<2x32xbf16>, vector<32x128xbf16>, vector<2x128xf32> -> vector<2x128xf32>
    %190 = arith.addf %186, %189 : vector<2x128xf32>
    %191 = vector.extract_strided_slice %190 {offsets = [0, 0], sizes = [2, 64], strides = [1, 1]} : vector<2x128xf32> to vector<2x64xf32>
    %192 = arith.negf %191 : vector<2x64xf32>
    %193 = math.exp %192 : vector<2x64xf32>
    %cst_56 = arith.constant 1.000000e+00 : f32
    %194 = vector.broadcast %cst_56 : f32 to vector<2x64xf32>
    %195 = arith.addf %194, %193 : vector<2x64xf32>
    %196 = arith.divf %194, %195 : vector<2x64xf32>
    %197 = vector.extract_strided_slice %190 {offsets = [0, 64], sizes = [2, 32], strides = [1, 1]} : vector<2x128xf32> to vector<2x32xf32>
    %198 = math.tanh %197 : vector<2x32xf32>
    %199 = vector.extract_strided_slice %190 {offsets = [0, 96], sizes = [2, 32], strides = [1, 1]} : vector<2x128xf32> to vector<2x32xf32>
    %200 = arith.negf %199 : vector<2x32xf32>
    %201 = math.exp %200 : vector<2x32xf32>
    %cst_57 = arith.constant 1.000000e+00 : f32
    %202 = vector.broadcast %cst_57 : f32 to vector<2x32xf32>
    %203 = arith.addf %202, %201 : vector<2x32xf32>
    %204 = arith.divf %202, %203 : vector<2x32xf32>
    %205 = vector.extract_strided_slice %196 {offsets = [0, 0], sizes = [2, 32], strides = [1, 1]} : vector<2x64xf32> to vector<2x32xf32>
    %206 = vector.extract_strided_slice %196 {offsets = [0, 32], sizes = [2, 32], strides = [1, 1]} : vector<2x64xf32> to vector<2x32xf32>
    %207 = arith.mulf %206, %174 : vector<2x32xf32>
    %208 = arith.mulf %205, %198 : vector<2x32xf32>
    %209 = arith.addf %207, %208 : vector<2x32xf32>
    %210 = math.tanh %209 : vector<2x32xf32>
    %211 = arith.mulf %204, %210 : vector<2x32xf32>
    %212 = arith.index_cast %c5_i32 : i32 to index
    %c0_58 = arith.constant 0 : index
    %c0_59 = arith.constant 0 : index
    %213 = vector.load %arg4[%212, %c0_58, %c0_59] : memref<8x2x32xf32, #tpu.memory_space<vmem>>, vector<1x2x32xf32>
    %214 = vector.shape_cast %213 : vector<1x2x32xf32> to vector<2x32xf32>
    %215 = vector.shape_cast %211 : vector<2x32xf32> to vector<1x2x32xf32>
    tpu.vector_store %arg4[%212, %c0_58, %c0_59], %215 {strides = array<i32>} : memref<8x2x32xf32, #tpu.memory_space<vmem>>, vector<1x2x32xf32>,
    %c6_i32 = arith.constant 6 : i32
    %216 = arith.index_cast %c6_i32 : i32 to index
    %c0_60 = arith.constant 0 : index
    %c0_61 = arith.constant 0 : index
    %217 = vector.load %arg1[%216, %c0_60, %c0_61] : memref<8x2x128xbf16, #tpu.memory_space<vmem>>, vector<1x2x128xbf16>
    %218 = vector.shape_cast %217 : vector<1x2x128xbf16> to vector<2x128xbf16>
    %219 = arith.extf %218 : vector<2x128xbf16> to vector<2x128xf32>
    %220 = vector.broadcast %3 : vector<1x128xf32> to vector<2x128xf32>
    %221 = arith.addf %219, %220 : vector<2x128xf32>
    %222 = arith.truncf %211 : vector<2x32xf32> to vector<2x32xbf16>
    %c0_62 = arith.constant 0 : index
    %c0_63 = arith.constant 0 : index
    %223 = vector.load %arg2[%c0_62, %c0_63] : memref<32x128xbf16, #tpu.memory_space<vmem>>, vector<32x128xbf16>
    %cst_64 = arith.constant dense<0.000000e+00> : vector<2x128xf32>
    %224 = tpu.matmul %222, %223, %cst_64 {dimension_numbers = #tpu.dot_dimension_numbers<[1], [0], [0], [1], [0, 0, 1, 1], [], []>} : vector<2x32xbf16>, vector<32x128xbf16>, vector<2x128xf32> -> vector<2x128xf32>
    %225 = arith.addf %221, %224 : vector<2x128xf32>
    %226 = vector.extract_strided_slice %225 {offsets = [0, 0], sizes = [2, 64], strides = [1, 1]} : vector<2x128xf32> to vector<2x64xf32>
    %227 = arith.negf %226 : vector<2x64xf32>
    %228 = math.exp %227 : vector<2x64xf32>
    %cst_65 = arith.constant 1.000000e+00 : f32
    %229 = vector.broadcast %cst_65 : f32 to vector<2x64xf32>
    %230 = arith.addf %229, %228 : vector<2x64xf32>
    %231 = arith.divf %229, %230 : vector<2x64xf32>
    %232 = vector.extract_strided_slice %225 {offsets = [0, 64], sizes = [2, 32], strides = [1, 1]} : vector<2x128xf32> to vector<2x32xf32>
    %233 = math.tanh %232 : vector<2x32xf32>
    %234 = vector.extract_strided_slice %225 {offsets = [0, 96], sizes = [2, 32], strides = [1, 1]} : vector<2x128xf32> to vector<2x32xf32>
    %235 = arith.negf %234 : vector<2x32xf32>
    %236 = math.exp %235 : vector<2x32xf32>
    %cst_66 = arith.constant 1.000000e+00 : f32
    %237 = vector.broadcast %cst_66 : f32 to vector<2x32xf32>
    %238 = arith.addf %237, %236 : vector<2x32xf32>
    %239 = arith.divf %237, %238 : vector<2x32xf32>
    %240 = vector.extract_strided_slice %231 {offsets = [0, 0], sizes = [2, 32], strides = [1, 1]} : vector<2x64xf32> to vector<2x32xf32>
    %241 = vector.extract_strided_slice %231 {offsets = [0, 32], sizes = [2, 32], strides = [1, 1]} : vector<2x64xf32> to vector<2x32xf32>
    %242 = arith.mulf %241, %209 : vector<2x32xf32>
    %243 = arith.mulf %240, %233 : vector<2x32xf32>
    %244 = arith.addf %242, %243 : vector<2x32xf32>
    %245 = math.tanh %244 : vector<2x32xf32>
    %246 = arith.mulf %239, %245 : vector<2x32xf32>
    %247 = arith.index_cast %c6_i32 : i32 to index
    %c0_67 = arith.constant 0 : index
    %c0_68 = arith.constant 0 : index
    %248 = vector.load %arg4[%247, %c0_67, %c0_68] : memref<8x2x32xf32, #tpu.memory_space<vmem>>, vector<1x2x32xf32>
    %249 = vector.shape_cast %248 : vector<1x2x32xf32> to vector<2x32xf32>
    %250 = vector.shape_cast %246 : vector<2x32xf32> to vector<1x2x32xf32>
    tpu.vector_store %arg4[%247, %c0_67, %c0_68], %250 {strides = array<i32>} : memref<8x2x32xf32, #tpu.memory_space<vmem>>, vector<1x2x32xf32>,
    %c7_i32 = arith.constant 7 : i32
    %251 = arith.index_cast %c7_i32 : i32 to index
    %c0_69 = arith.constant 0 : index
    %c0_70 = arith.constant 0 : index
    %252 = vector.load %arg1[%251, %c0_69, %c0_70] : memref<8x2x128xbf16, #tpu.memory_space<vmem>>, vector<1x2x128xbf16>
    %253 = vector.shape_cast %252 : vector<1x2x128xbf16> to vector<2x128xbf16>
    %254 = arith.extf %253 : vector<2x128xbf16> to vector<2x128xf32>
    %255 = vector.broadcast %3 : vector<1x128xf32> to vector<2x128xf32>
    %256 = arith.addf %254, %255 : vector<2x128xf32>
    %257 = arith.truncf %246 : vector<2x32xf32> to vector<2x32xbf16>
    %c0_71 = arith.constant 0 : index
    %c0_72 = arith.constant 0 : index
    %258 = vector.load %arg2[%c0_71, %c0_72] : memref<32x128xbf16, #tpu.memory_space<vmem>>, vector<32x128xbf16>
    %cst_73 = arith.constant dense<0.000000e+00> : vector<2x128xf32>
    %259 = tpu.matmul %257, %258, %cst_73 {dimension_numbers = #tpu.dot_dimension_numbers<[1], [0], [0], [1], [0, 0, 1, 1], [], []>} : vector<2x32xbf16>, vector<32x128xbf16>, vector<2x128xf32> -> vector<2x128xf32>
    %260 = arith.addf %256, %259 : vector<2x128xf32>
    %261 = vector.extract_strided_slice %260 {offsets = [0, 0], sizes = [2, 64], strides = [1, 1]} : vector<2x128xf32> to vector<2x64xf32>
    %262 = arith.negf %261 : vector<2x64xf32>
    %263 = math.exp %262 : vector<2x64xf32>
    %cst_74 = arith.constant 1.000000e+00 : f32
    %264 = vector.broadcast %cst_74 : f32 to vector<2x64xf32>
    %265 = arith.addf %264, %263 : vector<2x64xf32>
    %266 = arith.divf %264, %265 : vector<2x64xf32>
    %267 = vector.extract_strided_slice %260 {offsets = [0, 64], sizes = [2, 32], strides = [1, 1]} : vector<2x128xf32> to vector<2x32xf32>
    %268 = math.tanh %267 : vector<2x32xf32>
    %269 = vector.extract_strided_slice %260 {offsets = [0, 96], sizes = [2, 32], strides = [1, 1]} : vector<2x128xf32> to vector<2x32xf32>
    %270 = arith.negf %269 : vector<2x32xf32>
    %271 = math.exp %270 : vector<2x32xf32>
    %cst_75 = arith.constant 1.000000e+00 : f32
    %272 = vector.broadcast %cst_75 : f32 to vector<2x32xf32>
    %273 = arith.addf %272, %271 : vector<2x32xf32>
    %274 = arith.divf %272, %273 : vector<2x32xf32>
    %275 = vector.extract_strided_slice %266 {offsets = [0, 0], sizes = [2, 32], strides = [1, 1]} : vector<2x64xf32> to vector<2x32xf32>
    %276 = vector.extract_strided_slice %266 {offsets = [0, 32], sizes = [2, 32], strides = [1, 1]} : vector<2x64xf32> to vector<2x32xf32>
    %277 = arith.mulf %276, %244 : vector<2x32xf32>
    %278 = arith.mulf %275, %268 : vector<2x32xf32>
    %279 = arith.addf %277, %278 : vector<2x32xf32>
    %280 = math.tanh %279 : vector<2x32xf32>
    %281 = arith.mulf %274, %280 : vector<2x32xf32>
    %282 = arith.index_cast %c7_i32 : i32 to index
    %c0_76 = arith.constant 0 : index
    %c0_77 = arith.constant 0 : index
    %283 = vector.load %arg4[%282, %c0_76, %c0_77] : memref<8x2x32xf32, #tpu.memory_space<vmem>>, vector<1x2x32xf32>
    %284 = vector.shape_cast %283 : vector<1x2x32xf32> to vector<2x32xf32>
    %285 = vector.shape_cast %281 : vector<2x32xf32> to vector<1x2x32xf32>
    tpu.vector_store %arg4[%282, %c0_76, %c0_77], %285 {strides = array<i32>} : memref<8x2x32xf32, #tpu.memory_space<vmem>>, vector<1x2x32xf32>,
    %c8_i32 = arith.constant 8 : i32
    %c0_78 = arith.constant 0 : index
    %c0_79 = arith.constant 0 : index
    %286 = vector.load %arg5[%c0_78, %c0_79] : memref<2x32xf32, #tpu.memory_space<vmem>>, vector<2x32xf32>
    tpu.vector_store %arg5[%c0_78, %c0_79], %281 {strides = array<i32>} : memref<2x32xf32, #tpu.memory_space<vmem>>, vector<2x32xf32>,
    %c0_80 = arith.constant 0 : index
    %c0_81 = arith.constant 0 : index
    %287 = vector.load %arg6[%c0_80, %c0_81] : memref<2x32xf32, #tpu.memory_space<vmem>>, vector<2x32xf32>
    tpu.vector_store %arg6[%c0_80, %c0_81], %279 {strides = array<i32>} : memref<2x32xf32, #tpu.memory_space<vmem>>, vector<2x32xf32>,
    return
  }
  func.func @transform_0(%arg0: i32) -> (i32, i32, i32) {
    %c0_i32 = arith.constant 0 : i32
    %c0_i32_0 = arith.constant 0 : i32
    %c0_i32_1 = arith.constant 0 : i32
    return %arg0, %c0_i32, %c0_i32_0 : i32, i32, i32
  }
  func.func @transform_1(%arg0: i32) -> (i32, i32) {
    %c0_i32 = arith.constant 0 : i32
    %c0_i32_0 = arith.constant 0 : i32
    %c0_i32_1 = arith.constant 0 : i32
    return %c0_i32, %c0_i32_0 : i32, i32
  }
  func.func @transform_2(%arg0: i32) -> (i32, i32) {
    %c0_i32 = arith.constant 0 : i32
    %c0_i32_0 = arith.constant 0 : i32
    %c0_i32_1 = arith.constant 0 : i32
    return %c0_i32, %c0_i32_0 : i32, i32
  }
  func.func @transform_3(%arg0: i32) -> (i32, i32, i32) {
    %c0_i32 = arith.constant 0 : i32
    %c0_i32_0 = arith.constant 0 : i32
    %c0_i32_1 = arith.constant 0 : i32
    return %arg0, %c0_i32, %c0_i32_0 : i32, i32, i32
  }
}

module attributes {stable_mosaic.version = 11 : i64} {
  func.func @kernel(%arg0: i32, %arg1: memref<8x2x128xbf16, #tpu.memory_space<vmem>>, %arg2: memref<32x128xbf16, #tpu.memory_space<vmem>>, %arg3: memref<1x128xf32, #tpu.memory_space<vmem>>, %arg4: memref<2x8x32xf32, #tpu.memory_space<vmem>>, %arg5: memref<2x32xf32, #tpu.memory_space<vmem>>, %arg6: memref<2x32xf32, #tpu.memory_space<vmem>>) attributes {dimension_semantics = [#tpu.dimension_semantics<arbitrary>], iteration_bounds = array<i64: 1>, scalar_prefetch = 0 : i64, scratch_operands = 2 : i64, tpu.core_type = #tpu.core_type<tc>, window_params = [{transform_indices = @transform_0, window_bounds = array<i64: 8, 2, 128>}, {pipeline_mode = #tpu.pipeline_mode<synchronous>, transform_indices = @transform_1, window_bounds = array<i64: 32, 128>}, {pipeline_mode = #tpu.pipeline_mode<synchronous>, transform_indices = @transform_2, window_bounds = array<i64: 1, 128>}, {transform_indices = @transform_3, window_bounds = array<i64: 2, 8, 32>}]} {
    %c0_i32 = arith.constant 0 : i32
    %0 = arith.cmpi eq, %arg0, %c0_i32 : i32
    %1 = arith.extui %0 : i1 to i32
    %c0_i32_0 = arith.constant 0 : i32
    %2 = arith.cmpi ne, %1, %c0_i32_0 : i32
    scf.if %2 {
      %cst_82 = arith.constant 0.000000e+00 : f32
      %280 = vector.broadcast %cst_82 : f32 to vector<2x32xf32>
      %c0_83 = arith.constant 0 : index
      %c0_84 = arith.constant 0 : index
      %281 = vector.load %arg5[%c0_83, %c0_84] : memref<2x32xf32, #tpu.memory_space<vmem>>, vector<2x32xf32>
      tpu.vector_store %arg5[%c0_83, %c0_84], %280 {strides = array<i32>} : memref<2x32xf32, #tpu.memory_space<vmem>>, vector<2x32xf32>,
      %cst_85 = arith.constant 0.000000e+00 : f32
      %282 = vector.broadcast %cst_85 : f32 to vector<2x32xf32>
      %c0_86 = arith.constant 0 : index
      %c0_87 = arith.constant 0 : index
      %283 = vector.load %arg6[%c0_86, %c0_87] : memref<2x32xf32, #tpu.memory_space<vmem>>, vector<2x32xf32>
      tpu.vector_store %arg6[%c0_86, %c0_87], %282 {strides = array<i32>} : memref<2x32xf32, #tpu.memory_space<vmem>>, vector<2x32xf32>,
    } else {
    }
    %c0 = arith.constant 0 : index
    %c0_1 = arith.constant 0 : index
    %3 = vector.load %arg3[%c0, %c0_1] : memref<1x128xf32, #tpu.memory_space<vmem>>, vector<1x128xf32>
    %c0_2 = arith.constant 0 : index
    %c0_3 = arith.constant 0 : index
    %4 = vector.load %arg5[%c0_2, %c0_3] : memref<2x32xf32, #tpu.memory_space<vmem>>, vector<2x32xf32>
    %c0_4 = arith.constant 0 : index
    %c0_5 = arith.constant 0 : index
    %5 = vector.load %arg6[%c0_4, %c0_5] : memref<2x32xf32, #tpu.memory_space<vmem>>, vector<2x32xf32>
    %c0_i32_6 = arith.constant 0 : i32
    %6 = arith.index_cast %c0_i32_6 : i32 to index
    %c0_7 = arith.constant 0 : index
    %c0_8 = arith.constant 0 : index
    %7 = vector.load %arg1[%6, %c0_7, %c0_8] : memref<8x2x128xbf16, #tpu.memory_space<vmem>>, vector<1x2x128xbf16>
    %8 = vector.shape_cast %7 : vector<1x2x128xbf16> to vector<2x128xbf16>
    %9 = arith.extf %8 : vector<2x128xbf16> to vector<2x128xf32>
    %10 = vector.broadcast %3 : vector<1x128xf32> to vector<2x128xf32>
    %11 = arith.addf %9, %10 : vector<2x128xf32>
    %12 = arith.truncf %4 : vector<2x32xf32> to vector<2x32xbf16>
    %c0_9 = arith.constant 0 : index
    %c0_10 = arith.constant 0 : index
    %13 = vector.load %arg2[%c0_9, %c0_10] : memref<32x128xbf16, #tpu.memory_space<vmem>>, vector<32x128xbf16>
    %cst = arith.constant dense<0.000000e+00> : vector<2x128xf32>
    %14 = tpu.matmul %12, %13, %cst {dimension_numbers = #tpu.dot_dimension_numbers<[1], [0], [0], [1], [0, 0, 1, 1], [], []>} : vector<2x32xbf16>, vector<32x128xbf16>, vector<2x128xf32> -> vector<2x128xf32>
    %15 = arith.addf %11, %14 : vector<2x128xf32>
    %16 = vector.extract_strided_slice %15 {offsets = [0, 0], sizes = [2, 64], strides = [1, 1]} : vector<2x128xf32> to vector<2x64xf32>
    %17 = arith.negf %16 : vector<2x64xf32>
    %18 = math.exp %17 : vector<2x64xf32>
    %cst_11 = arith.constant 1.000000e+00 : f32
    %19 = vector.broadcast %cst_11 : f32 to vector<2x64xf32>
    %20 = arith.addf %19, %18 : vector<2x64xf32>
    %21 = arith.divf %19, %20 : vector<2x64xf32>
    %22 = vector.extract_strided_slice %15 {offsets = [0, 64], sizes = [2, 32], strides = [1, 1]} : vector<2x128xf32> to vector<2x32xf32>
    %23 = math.tanh %22 : vector<2x32xf32>
    %24 = vector.extract_strided_slice %15 {offsets = [0, 96], sizes = [2, 32], strides = [1, 1]} : vector<2x128xf32> to vector<2x32xf32>
    %25 = arith.negf %24 : vector<2x32xf32>
    %26 = math.exp %25 : vector<2x32xf32>
    %cst_12 = arith.constant 1.000000e+00 : f32
    %27 = vector.broadcast %cst_12 : f32 to vector<2x32xf32>
    %28 = arith.addf %27, %26 : vector<2x32xf32>
    %29 = arith.divf %27, %28 : vector<2x32xf32>
    %30 = vector.extract_strided_slice %21 {offsets = [0, 0], sizes = [2, 32], strides = [1, 1]} : vector<2x64xf32> to vector<2x32xf32>
    %31 = vector.extract_strided_slice %21 {offsets = [0, 32], sizes = [2, 32], strides = [1, 1]} : vector<2x64xf32> to vector<2x32xf32>
    %32 = arith.mulf %31, %5 : vector<2x32xf32>
    %33 = arith.mulf %30, %23 : vector<2x32xf32>
    %34 = arith.addf %32, %33 : vector<2x32xf32>
    %35 = math.tanh %34 : vector<2x32xf32>
    %36 = arith.mulf %29, %35 : vector<2x32xf32>
    %37 = vector.shape_cast %36 : vector<2x32xf32> to vector<2x1x32xf32>
    %c0_13 = arith.constant 0 : index
    %38 = arith.index_cast %c0_i32_6 : i32 to index
    %c0_14 = arith.constant 0 : index
    %39 = vector.load %arg4[%c0_13, %38, %c0_14] : memref<2x8x32xf32, #tpu.memory_space<vmem>>, vector<2x1x32xf32>
    tpu.vector_store %arg4[%c0_13, %38, %c0_14], %37 {strides = array<i32>} : memref<2x8x32xf32, #tpu.memory_space<vmem>>, vector<2x1x32xf32>,
    %c1_i32 = arith.constant 1 : i32
    %40 = arith.index_cast %c1_i32 : i32 to index
    %c0_15 = arith.constant 0 : index
    %c0_16 = arith.constant 0 : index
    %41 = vector.load %arg1[%40, %c0_15, %c0_16] : memref<8x2x128xbf16, #tpu.memory_space<vmem>>, vector<1x2x128xbf16>
    %42 = vector.shape_cast %41 : vector<1x2x128xbf16> to vector<2x128xbf16>
    %43 = arith.extf %42 : vector<2x128xbf16> to vector<2x128xf32>
    %44 = vector.broadcast %3 : vector<1x128xf32> to vector<2x128xf32>
    %45 = arith.addf %43, %44 : vector<2x128xf32>
    %46 = arith.truncf %36 : vector<2x32xf32> to vector<2x32xbf16>
    %c0_17 = arith.constant 0 : index
    %c0_18 = arith.constant 0 : index
    %47 = vector.load %arg2[%c0_17, %c0_18] : memref<32x128xbf16, #tpu.memory_space<vmem>>, vector<32x128xbf16>
    %cst_19 = arith.constant dense<0.000000e+00> : vector<2x128xf32>
    %48 = tpu.matmul %46, %47, %cst_19 {dimension_numbers = #tpu.dot_dimension_numbers<[1], [0], [0], [1], [0, 0, 1, 1], [], []>} : vector<2x32xbf16>, vector<32x128xbf16>, vector<2x128xf32> -> vector<2x128xf32>
    %49 = arith.addf %45, %48 : vector<2x128xf32>
    %50 = vector.extract_strided_slice %49 {offsets = [0, 0], sizes = [2, 64], strides = [1, 1]} : vector<2x128xf32> to vector<2x64xf32>
    %51 = arith.negf %50 : vector<2x64xf32>
    %52 = math.exp %51 : vector<2x64xf32>
    %cst_20 = arith.constant 1.000000e+00 : f32
    %53 = vector.broadcast %cst_20 : f32 to vector<2x64xf32>
    %54 = arith.addf %53, %52 : vector<2x64xf32>
    %55 = arith.divf %53, %54 : vector<2x64xf32>
    %56 = vector.extract_strided_slice %49 {offsets = [0, 64], sizes = [2, 32], strides = [1, 1]} : vector<2x128xf32> to vector<2x32xf32>
    %57 = math.tanh %56 : vector<2x32xf32>
    %58 = vector.extract_strided_slice %49 {offsets = [0, 96], sizes = [2, 32], strides = [1, 1]} : vector<2x128xf32> to vector<2x32xf32>
    %59 = arith.negf %58 : vector<2x32xf32>
    %60 = math.exp %59 : vector<2x32xf32>
    %cst_21 = arith.constant 1.000000e+00 : f32
    %61 = vector.broadcast %cst_21 : f32 to vector<2x32xf32>
    %62 = arith.addf %61, %60 : vector<2x32xf32>
    %63 = arith.divf %61, %62 : vector<2x32xf32>
    %64 = vector.extract_strided_slice %55 {offsets = [0, 0], sizes = [2, 32], strides = [1, 1]} : vector<2x64xf32> to vector<2x32xf32>
    %65 = vector.extract_strided_slice %55 {offsets = [0, 32], sizes = [2, 32], strides = [1, 1]} : vector<2x64xf32> to vector<2x32xf32>
    %66 = arith.mulf %65, %34 : vector<2x32xf32>
    %67 = arith.mulf %64, %57 : vector<2x32xf32>
    %68 = arith.addf %66, %67 : vector<2x32xf32>
    %69 = math.tanh %68 : vector<2x32xf32>
    %70 = arith.mulf %63, %69 : vector<2x32xf32>
    %71 = vector.shape_cast %70 : vector<2x32xf32> to vector<2x1x32xf32>
    %c0_22 = arith.constant 0 : index
    %72 = arith.index_cast %c1_i32 : i32 to index
    %c0_23 = arith.constant 0 : index
    %73 = vector.load %arg4[%c0_22, %72, %c0_23] : memref<2x8x32xf32, #tpu.memory_space<vmem>>, vector<2x1x32xf32>
    tpu.vector_store %arg4[%c0_22, %72, %c0_23], %71 {strides = array<i32>} : memref<2x8x32xf32, #tpu.memory_space<vmem>>, vector<2x1x32xf32>,
    %c2_i32 = arith.constant 2 : i32
    %74 = arith.index_cast %c2_i32 : i32 to index
    %c0_24 = arith.constant 0 : index
    %c0_25 = arith.constant 0 : index
    %75 = vector.load %arg1[%74, %c0_24, %c0_25] : memref<8x2x128xbf16, #tpu.memory_space<vmem>>, vector<1x2x128xbf16>
    %76 = vector.shape_cast %75 : vector<1x2x128xbf16> to vector<2x128xbf16>
    %77 = arith.extf %76 : vector<2x128xbf16> to vector<2x128xf32>
    %78 = vector.broadcast %3 : vector<1x128xf32> to vector<2x128xf32>
    %79 = arith.addf %77, %78 : vector<2x128xf32>
    %80 = arith.truncf %70 : vector<2x32xf32> to vector<2x32xbf16>
    %c0_26 = arith.constant 0 : index
    %c0_27 = arith.constant 0 : index
    %81 = vector.load %arg2[%c0_26, %c0_27] : memref<32x128xbf16, #tpu.memory_space<vmem>>, vector<32x128xbf16>
    %cst_28 = arith.constant dense<0.000000e+00> : vector<2x128xf32>
    %82 = tpu.matmul %80, %81, %cst_28 {dimension_numbers = #tpu.dot_dimension_numbers<[1], [0], [0], [1], [0, 0, 1, 1], [], []>} : vector<2x32xbf16>, vector<32x128xbf16>, vector<2x128xf32> -> vector<2x128xf32>
    %83 = arith.addf %79, %82 : vector<2x128xf32>
    %84 = vector.extract_strided_slice %83 {offsets = [0, 0], sizes = [2, 64], strides = [1, 1]} : vector<2x128xf32> to vector<2x64xf32>
    %85 = arith.negf %84 : vector<2x64xf32>
    %86 = math.exp %85 : vector<2x64xf32>
    %cst_29 = arith.constant 1.000000e+00 : f32
    %87 = vector.broadcast %cst_29 : f32 to vector<2x64xf32>
    %88 = arith.addf %87, %86 : vector<2x64xf32>
    %89 = arith.divf %87, %88 : vector<2x64xf32>
    %90 = vector.extract_strided_slice %83 {offsets = [0, 64], sizes = [2, 32], strides = [1, 1]} : vector<2x128xf32> to vector<2x32xf32>
    %91 = math.tanh %90 : vector<2x32xf32>
    %92 = vector.extract_strided_slice %83 {offsets = [0, 96], sizes = [2, 32], strides = [1, 1]} : vector<2x128xf32> to vector<2x32xf32>
    %93 = arith.negf %92 : vector<2x32xf32>
    %94 = math.exp %93 : vector<2x32xf32>
    %cst_30 = arith.constant 1.000000e+00 : f32
    %95 = vector.broadcast %cst_30 : f32 to vector<2x32xf32>
    %96 = arith.addf %95, %94 : vector<2x32xf32>
    %97 = arith.divf %95, %96 : vector<2x32xf32>
    %98 = vector.extract_strided_slice %89 {offsets = [0, 0], sizes = [2, 32], strides = [1, 1]} : vector<2x64xf32> to vector<2x32xf32>
    %99 = vector.extract_strided_slice %89 {offsets = [0, 32], sizes = [2, 32], strides = [1, 1]} : vector<2x64xf32> to vector<2x32xf32>
    %100 = arith.mulf %99, %68 : vector<2x32xf32>
    %101 = arith.mulf %98, %91 : vector<2x32xf32>
    %102 = arith.addf %100, %101 : vector<2x32xf32>
    %103 = math.tanh %102 : vector<2x32xf32>
    %104 = arith.mulf %97, %103 : vector<2x32xf32>
    %105 = vector.shape_cast %104 : vector<2x32xf32> to vector<2x1x32xf32>
    %c0_31 = arith.constant 0 : index
    %106 = arith.index_cast %c2_i32 : i32 to index
    %c0_32 = arith.constant 0 : index
    %107 = vector.load %arg4[%c0_31, %106, %c0_32] : memref<2x8x32xf32, #tpu.memory_space<vmem>>, vector<2x1x32xf32>
    tpu.vector_store %arg4[%c0_31, %106, %c0_32], %105 {strides = array<i32>} : memref<2x8x32xf32, #tpu.memory_space<vmem>>, vector<2x1x32xf32>,
    %c3_i32 = arith.constant 3 : i32
    %108 = arith.index_cast %c3_i32 : i32 to index
    %c0_33 = arith.constant 0 : index
    %c0_34 = arith.constant 0 : index
    %109 = vector.load %arg1[%108, %c0_33, %c0_34] : memref<8x2x128xbf16, #tpu.memory_space<vmem>>, vector<1x2x128xbf16>
    %110 = vector.shape_cast %109 : vector<1x2x128xbf16> to vector<2x128xbf16>
    %111 = arith.extf %110 : vector<2x128xbf16> to vector<2x128xf32>
    %112 = vector.broadcast %3 : vector<1x128xf32> to vector<2x128xf32>
    %113 = arith.addf %111, %112 : vector<2x128xf32>
    %114 = arith.truncf %104 : vector<2x32xf32> to vector<2x32xbf16>
    %c0_35 = arith.constant 0 : index
    %c0_36 = arith.constant 0 : index
    %115 = vector.load %arg2[%c0_35, %c0_36] : memref<32x128xbf16, #tpu.memory_space<vmem>>, vector<32x128xbf16>
    %cst_37 = arith.constant dense<0.000000e+00> : vector<2x128xf32>
    %116 = tpu.matmul %114, %115, %cst_37 {dimension_numbers = #tpu.dot_dimension_numbers<[1], [0], [0], [1], [0, 0, 1, 1], [], []>} : vector<2x32xbf16>, vector<32x128xbf16>, vector<2x128xf32> -> vector<2x128xf32>
    %117 = arith.addf %113, %116 : vector<2x128xf32>
    %118 = vector.extract_strided_slice %117 {offsets = [0, 0], sizes = [2, 64], strides = [1, 1]} : vector<2x128xf32> to vector<2x64xf32>
    %119 = arith.negf %118 : vector<2x64xf32>
    %120 = math.exp %119 : vector<2x64xf32>
    %cst_38 = arith.constant 1.000000e+00 : f32
    %121 = vector.broadcast %cst_38 : f32 to vector<2x64xf32>
    %122 = arith.addf %121, %120 : vector<2x64xf32>
    %123 = arith.divf %121, %122 : vector<2x64xf32>
    %124 = vector.extract_strided_slice %117 {offsets = [0, 64], sizes = [2, 32], strides = [1, 1]} : vector<2x128xf32> to vector<2x32xf32>
    %125 = math.tanh %124 : vector<2x32xf32>
    %126 = vector.extract_strided_slice %117 {offsets = [0, 96], sizes = [2, 32], strides = [1, 1]} : vector<2x128xf32> to vector<2x32xf32>
    %127 = arith.negf %126 : vector<2x32xf32>
    %128 = math.exp %127 : vector<2x32xf32>
    %cst_39 = arith.constant 1.000000e+00 : f32
    %129 = vector.broadcast %cst_39 : f32 to vector<2x32xf32>
    %130 = arith.addf %129, %128 : vector<2x32xf32>
    %131 = arith.divf %129, %130 : vector<2x32xf32>
    %132 = vector.extract_strided_slice %123 {offsets = [0, 0], sizes = [2, 32], strides = [1, 1]} : vector<2x64xf32> to vector<2x32xf32>
    %133 = vector.extract_strided_slice %123 {offsets = [0, 32], sizes = [2, 32], strides = [1, 1]} : vector<2x64xf32> to vector<2x32xf32>
    %134 = arith.mulf %133, %102 : vector<2x32xf32>
    %135 = arith.mulf %132, %125 : vector<2x32xf32>
    %136 = arith.addf %134, %135 : vector<2x32xf32>
    %137 = math.tanh %136 : vector<2x32xf32>
    %138 = arith.mulf %131, %137 : vector<2x32xf32>
    %139 = vector.shape_cast %138 : vector<2x32xf32> to vector<2x1x32xf32>
    %c0_40 = arith.constant 0 : index
    %140 = arith.index_cast %c3_i32 : i32 to index
    %c0_41 = arith.constant 0 : index
    %141 = vector.load %arg4[%c0_40, %140, %c0_41] : memref<2x8x32xf32, #tpu.memory_space<vmem>>, vector<2x1x32xf32>
    tpu.vector_store %arg4[%c0_40, %140, %c0_41], %139 {strides = array<i32>} : memref<2x8x32xf32, #tpu.memory_space<vmem>>, vector<2x1x32xf32>,
    %c4_i32 = arith.constant 4 : i32
    %142 = arith.index_cast %c4_i32 : i32 to index
    %c0_42 = arith.constant 0 : index
    %c0_43 = arith.constant 0 : index
    %143 = vector.load %arg1[%142, %c0_42, %c0_43] : memref<8x2x128xbf16, #tpu.memory_space<vmem>>, vector<1x2x128xbf16>
    %144 = vector.shape_cast %143 : vector<1x2x128xbf16> to vector<2x128xbf16>
    %145 = arith.extf %144 : vector<2x128xbf16> to vector<2x128xf32>
    %146 = vector.broadcast %3 : vector<1x128xf32> to vector<2x128xf32>
    %147 = arith.addf %145, %146 : vector<2x128xf32>
    %148 = arith.truncf %138 : vector<2x32xf32> to vector<2x32xbf16>
    %c0_44 = arith.constant 0 : index
    %c0_45 = arith.constant 0 : index
    %149 = vector.load %arg2[%c0_44, %c0_45] : memref<32x128xbf16, #tpu.memory_space<vmem>>, vector<32x128xbf16>
    %cst_46 = arith.constant dense<0.000000e+00> : vector<2x128xf32>
    %150 = tpu.matmul %148, %149, %cst_46 {dimension_numbers = #tpu.dot_dimension_numbers<[1], [0], [0], [1], [0, 0, 1, 1], [], []>} : vector<2x32xbf16>, vector<32x128xbf16>, vector<2x128xf32> -> vector<2x128xf32>
    %151 = arith.addf %147, %150 : vector<2x128xf32>
    %152 = vector.extract_strided_slice %151 {offsets = [0, 0], sizes = [2, 64], strides = [1, 1]} : vector<2x128xf32> to vector<2x64xf32>
    %153 = arith.negf %152 : vector<2x64xf32>
    %154 = math.exp %153 : vector<2x64xf32>
    %cst_47 = arith.constant 1.000000e+00 : f32
    %155 = vector.broadcast %cst_47 : f32 to vector<2x64xf32>
    %156 = arith.addf %155, %154 : vector<2x64xf32>
    %157 = arith.divf %155, %156 : vector<2x64xf32>
    %158 = vector.extract_strided_slice %151 {offsets = [0, 64], sizes = [2, 32], strides = [1, 1]} : vector<2x128xf32> to vector<2x32xf32>
    %159 = math.tanh %158 : vector<2x32xf32>
    %160 = vector.extract_strided_slice %151 {offsets = [0, 96], sizes = [2, 32], strides = [1, 1]} : vector<2x128xf32> to vector<2x32xf32>
    %161 = arith.negf %160 : vector<2x32xf32>
    %162 = math.exp %161 : vector<2x32xf32>
    %cst_48 = arith.constant 1.000000e+00 : f32
    %163 = vector.broadcast %cst_48 : f32 to vector<2x32xf32>
    %164 = arith.addf %163, %162 : vector<2x32xf32>
    %165 = arith.divf %163, %164 : vector<2x32xf32>
    %166 = vector.extract_strided_slice %157 {offsets = [0, 0], sizes = [2, 32], strides = [1, 1]} : vector<2x64xf32> to vector<2x32xf32>
    %167 = vector.extract_strided_slice %157 {offsets = [0, 32], sizes = [2, 32], strides = [1, 1]} : vector<2x64xf32> to vector<2x32xf32>
    %168 = arith.mulf %167, %136 : vector<2x32xf32>
    %169 = arith.mulf %166, %159 : vector<2x32xf32>
    %170 = arith.addf %168, %169 : vector<2x32xf32>
    %171 = math.tanh %170 : vector<2x32xf32>
    %172 = arith.mulf %165, %171 : vector<2x32xf32>
    %173 = vector.shape_cast %172 : vector<2x32xf32> to vector<2x1x32xf32>
    %c0_49 = arith.constant 0 : index
    %174 = arith.index_cast %c4_i32 : i32 to index
    %c0_50 = arith.constant 0 : index
    %175 = vector.load %arg4[%c0_49, %174, %c0_50] : memref<2x8x32xf32, #tpu.memory_space<vmem>>, vector<2x1x32xf32>
    tpu.vector_store %arg4[%c0_49, %174, %c0_50], %173 {strides = array<i32>} : memref<2x8x32xf32, #tpu.memory_space<vmem>>, vector<2x1x32xf32>,
    %c5_i32 = arith.constant 5 : i32
    %176 = arith.index_cast %c5_i32 : i32 to index
    %c0_51 = arith.constant 0 : index
    %c0_52 = arith.constant 0 : index
    %177 = vector.load %arg1[%176, %c0_51, %c0_52] : memref<8x2x128xbf16, #tpu.memory_space<vmem>>, vector<1x2x128xbf16>
    %178 = vector.shape_cast %177 : vector<1x2x128xbf16> to vector<2x128xbf16>
    %179 = arith.extf %178 : vector<2x128xbf16> to vector<2x128xf32>
    %180 = vector.broadcast %3 : vector<1x128xf32> to vector<2x128xf32>
    %181 = arith.addf %179, %180 : vector<2x128xf32>
    %182 = arith.truncf %172 : vector<2x32xf32> to vector<2x32xbf16>
    %c0_53 = arith.constant 0 : index
    %c0_54 = arith.constant 0 : index
    %183 = vector.load %arg2[%c0_53, %c0_54] : memref<32x128xbf16, #tpu.memory_space<vmem>>, vector<32x128xbf16>
    %cst_55 = arith.constant dense<0.000000e+00> : vector<2x128xf32>
    %184 = tpu.matmul %182, %183, %cst_55 {dimension_numbers = #tpu.dot_dimension_numbers<[1], [0], [0], [1], [0, 0, 1, 1], [], []>} : vector<2x32xbf16>, vector<32x128xbf16>, vector<2x128xf32> -> vector<2x128xf32>
    %185 = arith.addf %181, %184 : vector<2x128xf32>
    %186 = vector.extract_strided_slice %185 {offsets = [0, 0], sizes = [2, 64], strides = [1, 1]} : vector<2x128xf32> to vector<2x64xf32>
    %187 = arith.negf %186 : vector<2x64xf32>
    %188 = math.exp %187 : vector<2x64xf32>
    %cst_56 = arith.constant 1.000000e+00 : f32
    %189 = vector.broadcast %cst_56 : f32 to vector<2x64xf32>
    %190 = arith.addf %189, %188 : vector<2x64xf32>
    %191 = arith.divf %189, %190 : vector<2x64xf32>
    %192 = vector.extract_strided_slice %185 {offsets = [0, 64], sizes = [2, 32], strides = [1, 1]} : vector<2x128xf32> to vector<2x32xf32>
    %193 = math.tanh %192 : vector<2x32xf32>
    %194 = vector.extract_strided_slice %185 {offsets = [0, 96], sizes = [2, 32], strides = [1, 1]} : vector<2x128xf32> to vector<2x32xf32>
    %195 = arith.negf %194 : vector<2x32xf32>
    %196 = math.exp %195 : vector<2x32xf32>
    %cst_57 = arith.constant 1.000000e+00 : f32
    %197 = vector.broadcast %cst_57 : f32 to vector<2x32xf32>
    %198 = arith.addf %197, %196 : vector<2x32xf32>
    %199 = arith.divf %197, %198 : vector<2x32xf32>
    %200 = vector.extract_strided_slice %191 {offsets = [0, 0], sizes = [2, 32], strides = [1, 1]} : vector<2x64xf32> to vector<2x32xf32>
    %201 = vector.extract_strided_slice %191 {offsets = [0, 32], sizes = [2, 32], strides = [1, 1]} : vector<2x64xf32> to vector<2x32xf32>
    %202 = arith.mulf %201, %170 : vector<2x32xf32>
    %203 = arith.mulf %200, %193 : vector<2x32xf32>
    %204 = arith.addf %202, %203 : vector<2x32xf32>
    %205 = math.tanh %204 : vector<2x32xf32>
    %206 = arith.mulf %199, %205 : vector<2x32xf32>
    %207 = vector.shape_cast %206 : vector<2x32xf32> to vector<2x1x32xf32>
    %c0_58 = arith.constant 0 : index
    %208 = arith.index_cast %c5_i32 : i32 to index
    %c0_59 = arith.constant 0 : index
    %209 = vector.load %arg4[%c0_58, %208, %c0_59] : memref<2x8x32xf32, #tpu.memory_space<vmem>>, vector<2x1x32xf32>
    tpu.vector_store %arg4[%c0_58, %208, %c0_59], %207 {strides = array<i32>} : memref<2x8x32xf32, #tpu.memory_space<vmem>>, vector<2x1x32xf32>,
    %c6_i32 = arith.constant 6 : i32
    %210 = arith.index_cast %c6_i32 : i32 to index
    %c0_60 = arith.constant 0 : index
    %c0_61 = arith.constant 0 : index
    %211 = vector.load %arg1[%210, %c0_60, %c0_61] : memref<8x2x128xbf16, #tpu.memory_space<vmem>>, vector<1x2x128xbf16>
    %212 = vector.shape_cast %211 : vector<1x2x128xbf16> to vector<2x128xbf16>
    %213 = arith.extf %212 : vector<2x128xbf16> to vector<2x128xf32>
    %214 = vector.broadcast %3 : vector<1x128xf32> to vector<2x128xf32>
    %215 = arith.addf %213, %214 : vector<2x128xf32>
    %216 = arith.truncf %206 : vector<2x32xf32> to vector<2x32xbf16>
    %c0_62 = arith.constant 0 : index
    %c0_63 = arith.constant 0 : index
    %217 = vector.load %arg2[%c0_62, %c0_63] : memref<32x128xbf16, #tpu.memory_space<vmem>>, vector<32x128xbf16>
    %cst_64 = arith.constant dense<0.000000e+00> : vector<2x128xf32>
    %218 = tpu.matmul %216, %217, %cst_64 {dimension_numbers = #tpu.dot_dimension_numbers<[1], [0], [0], [1], [0, 0, 1, 1], [], []>} : vector<2x32xbf16>, vector<32x128xbf16>, vector<2x128xf32> -> vector<2x128xf32>
    %219 = arith.addf %215, %218 : vector<2x128xf32>
    %220 = vector.extract_strided_slice %219 {offsets = [0, 0], sizes = [2, 64], strides = [1, 1]} : vector<2x128xf32> to vector<2x64xf32>
    %221 = arith.negf %220 : vector<2x64xf32>
    %222 = math.exp %221 : vector<2x64xf32>
    %cst_65 = arith.constant 1.000000e+00 : f32
    %223 = vector.broadcast %cst_65 : f32 to vector<2x64xf32>
    %224 = arith.addf %223, %222 : vector<2x64xf32>
    %225 = arith.divf %223, %224 : vector<2x64xf32>
    %226 = vector.extract_strided_slice %219 {offsets = [0, 64], sizes = [2, 32], strides = [1, 1]} : vector<2x128xf32> to vector<2x32xf32>
    %227 = math.tanh %226 : vector<2x32xf32>
    %228 = vector.extract_strided_slice %219 {offsets = [0, 96], sizes = [2, 32], strides = [1, 1]} : vector<2x128xf32> to vector<2x32xf32>
    %229 = arith.negf %228 : vector<2x32xf32>
    %230 = math.exp %229 : vector<2x32xf32>
    %cst_66 = arith.constant 1.000000e+00 : f32
    %231 = vector.broadcast %cst_66 : f32 to vector<2x32xf32>
    %232 = arith.addf %231, %230 : vector<2x32xf32>
    %233 = arith.divf %231, %232 : vector<2x32xf32>
    %234 = vector.extract_strided_slice %225 {offsets = [0, 0], sizes = [2, 32], strides = [1, 1]} : vector<2x64xf32> to vector<2x32xf32>
    %235 = vector.extract_strided_slice %225 {offsets = [0, 32], sizes = [2, 32], strides = [1, 1]} : vector<2x64xf32> to vector<2x32xf32>
    %236 = arith.mulf %235, %204 : vector<2x32xf32>
    %237 = arith.mulf %234, %227 : vector<2x32xf32>
    %238 = arith.addf %236, %237 : vector<2x32xf32>
    %239 = math.tanh %238 : vector<2x32xf32>
    %240 = arith.mulf %233, %239 : vector<2x32xf32>
    %241 = vector.shape_cast %240 : vector<2x32xf32> to vector<2x1x32xf32>
    %c0_67 = arith.constant 0 : index
    %242 = arith.index_cast %c6_i32 : i32 to index
    %c0_68 = arith.constant 0 : index
    %243 = vector.load %arg4[%c0_67, %242, %c0_68] : memref<2x8x32xf32, #tpu.memory_space<vmem>>, vector<2x1x32xf32>
    tpu.vector_store %arg4[%c0_67, %242, %c0_68], %241 {strides = array<i32>} : memref<2x8x32xf32, #tpu.memory_space<vmem>>, vector<2x1x32xf32>,
    %c7_i32 = arith.constant 7 : i32
    %244 = arith.index_cast %c7_i32 : i32 to index
    %c0_69 = arith.constant 0 : index
    %c0_70 = arith.constant 0 : index
    %245 = vector.load %arg1[%244, %c0_69, %c0_70] : memref<8x2x128xbf16, #tpu.memory_space<vmem>>, vector<1x2x128xbf16>
    %246 = vector.shape_cast %245 : vector<1x2x128xbf16> to vector<2x128xbf16>
    %247 = arith.extf %246 : vector<2x128xbf16> to vector<2x128xf32>
    %248 = vector.broadcast %3 : vector<1x128xf32> to vector<2x128xf32>
    %249 = arith.addf %247, %248 : vector<2x128xf32>
    %250 = arith.truncf %240 : vector<2x32xf32> to vector<2x32xbf16>
    %c0_71 = arith.constant 0 : index
    %c0_72 = arith.constant 0 : index
    %251 = vector.load %arg2[%c0_71, %c0_72] : memref<32x128xbf16, #tpu.memory_space<vmem>>, vector<32x128xbf16>
    %cst_73 = arith.constant dense<0.000000e+00> : vector<2x128xf32>
    %252 = tpu.matmul %250, %251, %cst_73 {dimension_numbers = #tpu.dot_dimension_numbers<[1], [0], [0], [1], [0, 0, 1, 1], [], []>} : vector<2x32xbf16>, vector<32x128xbf16>, vector<2x128xf32> -> vector<2x128xf32>
    %253 = arith.addf %249, %252 : vector<2x128xf32>
    %254 = vector.extract_strided_slice %253 {offsets = [0, 0], sizes = [2, 64], strides = [1, 1]} : vector<2x128xf32> to vector<2x64xf32>
    %255 = arith.negf %254 : vector<2x64xf32>
    %256 = math.exp %255 : vector<2x64xf32>
    %cst_74 = arith.constant 1.000000e+00 : f32
    %257 = vector.broadcast %cst_74 : f32 to vector<2x64xf32>
    %258 = arith.addf %257, %256 : vector<2x64xf32>
    %259 = arith.divf %257, %258 : vector<2x64xf32>
    %260 = vector.extract_strided_slice %253 {offsets = [0, 64], sizes = [2, 32], strides = [1, 1]} : vector<2x128xf32> to vector<2x32xf32>
    %261 = math.tanh %260 : vector<2x32xf32>
    %262 = vector.extract_strided_slice %253 {offsets = [0, 96], sizes = [2, 32], strides = [1, 1]} : vector<2x128xf32> to vector<2x32xf32>
    %263 = arith.negf %262 : vector<2x32xf32>
    %264 = math.exp %263 : vector<2x32xf32>
    %cst_75 = arith.constant 1.000000e+00 : f32
    %265 = vector.broadcast %cst_75 : f32 to vector<2x32xf32>
    %266 = arith.addf %265, %264 : vector<2x32xf32>
    %267 = arith.divf %265, %266 : vector<2x32xf32>
    %268 = vector.extract_strided_slice %259 {offsets = [0, 0], sizes = [2, 32], strides = [1, 1]} : vector<2x64xf32> to vector<2x32xf32>
    %269 = vector.extract_strided_slice %259 {offsets = [0, 32], sizes = [2, 32], strides = [1, 1]} : vector<2x64xf32> to vector<2x32xf32>
    %270 = arith.mulf %269, %238 : vector<2x32xf32>
    %271 = arith.mulf %268, %261 : vector<2x32xf32>
    %272 = arith.addf %270, %271 : vector<2x32xf32>
    %273 = math.tanh %272 : vector<2x32xf32>
    %274 = arith.mulf %267, %273 : vector<2x32xf32>
    %275 = vector.shape_cast %274 : vector<2x32xf32> to vector<2x1x32xf32>
    %c0_76 = arith.constant 0 : index
    %276 = arith.index_cast %c7_i32 : i32 to index
    %c0_77 = arith.constant 0 : index
    %277 = vector.load %arg4[%c0_76, %276, %c0_77] : memref<2x8x32xf32, #tpu.memory_space<vmem>>, vector<2x1x32xf32>
    tpu.vector_store %arg4[%c0_76, %276, %c0_77], %275 {strides = array<i32>} : memref<2x8x32xf32, #tpu.memory_space<vmem>>, vector<2x1x32xf32>,
    %c8_i32 = arith.constant 8 : i32
    %c0_78 = arith.constant 0 : index
    %c0_79 = arith.constant 0 : index
    %278 = vector.load %arg5[%c0_78, %c0_79] : memref<2x32xf32, #tpu.memory_space<vmem>>, vector<2x32xf32>
    tpu.vector_store %arg5[%c0_78, %c0_79], %274 {strides = array<i32>} : memref<2x32xf32, #tpu.memory_space<vmem>>, vector<2x32xf32>,
    %c0_80 = arith.constant 0 : index
    %c0_81 = arith.constant 0 : index
    %279 = vector.load %arg6[%c0_80, %c0_81] : memref<2x32xf32, #tpu.memory_space<vmem>>, vector<2x32xf32>
    tpu.vector_store %arg6[%c0_80, %c0_81], %272 {strides = array<i32>} : memref<2x32xf32, #tpu.memory_space<vmem>>, vector<2x32xf32>,
    return
  }
  func.func @transform_0(%arg0: i32) -> (i32, i32, i32) {
    %c0_i32 = arith.constant 0 : i32
    %c0_i32_0 = arith.constant 0 : i32
    %c0_i32_1 = arith.constant 0 : i32
    return %arg0, %c0_i32, %c0_i32_0 : i32, i32, i32
  }
  func.func @transform_1(%arg0: i32) -> (i32, i32) {
    %c0_i32 = arith.constant 0 : i32
    %c0_i32_0 = arith.constant 0 : i32
    %c0_i32_1 = arith.constant 0 : i32
    return %c0_i32, %c0_i32_0 : i32, i32
  }
  func.func @transform_2(%arg0: i32) -> (i32, i32) {
    %c0_i32 = arith.constant 0 : i32
    %c0_i32_0 = arith.constant 0 : i32
    %c0_i32_1 = arith.constant 0 : i32
    return %c0_i32, %c0_i32_0 : i32, i32
  }
  func.func @transform_3(%arg0: i32) -> (i32, i32, i32) {
    %c0_i32 = arith.constant 0 : i32
    %c0_i32_0 = arith.constant 0 : i32
    %c0_i32_1 = arith.constant 0 : i32
    return %c0_i32, %arg0, %c0_i32_0 : i32, i32, i32
  }
}

</mosaic_0001>

<bundles_post_ra>
// kernel: encoder_forward.4
= control target key start
LH: loop header
LB: loop body
LE: loop exit
PB: predicated region body
PF: predicated region fallthrough
CT: control target
= control target key end

     0   :  { %v123_v0 = vmov 0.0   ;;  %vm124_vm0 = vmmov 0   ;;  %vm35_vm1 = vcmask 261120   ;;  %s152_s1 = inlined_call_operand.vmem [shape: bf16[32,128], index: 1, kind: input, shape index: {}]   ;;  %s153_s0 = inlined_call_operand.vmem [shape: bf16[16,32], index: 0, kind: input, shape index: {}]   ;;  %s154_s2 = inlined_call_operand.vmem [shape: bf16[16,128], index: 2, kind: output, shape index: {}]  }
   0x1   :  { %110 = vmatprep.subr.bf16.mxu0 %v123_v0  ;;  %v120_v1 = vld [vmem:[%s152_s1] sm:$0xff]   ;;  %114 = vmatprep.mubr.msk.bf16.mxu0 %vm124_vm0, %v123_v0  ;;  %v121_v2 = vld [vmem:[%s152_s1 + $0x8] sm:$0xff]  }
   0x2   :  { %111 = vmatpush3.bf16.msra.mxu0 %v120_v1  ;;  %v122_v3 = vld [vmem:[%s153_s0] sm:$0xff]  }
   0x3   :  { %112 = vmatprep.subr.bf16.mxu0 %v123_v0 }
   0x6   :  { %113 = vmatpush3.bf16.msra.mxu0 %v121_v2 }
   0x9   :  { %115 = vmatmul.mubr.msk.bf16.vlgmr.msra.gmra.mrb[0].mxu0 %vm35_vm1, %v122_v3 }
  0xdc   :  { %v73_v4 = vpop.f32.mrb[0].mxu0 }
  0xdd   :  { %v116_v5 = vpop.f32.mrb[1].mxu0 }
  0xde   :  { %v76_v6 = vpop.f32.mrb[2].mxu0 }
  0xdf   :  { %v105_v7 = vpack.c.bf16 %v76_v6, %v73_v4  ;;  %v117_v8 = vpop.f32.mrb[3].mxu0 }
  0xe1   :  { %106 = vst [vmem:[%s154_s2] sm:$0xff] %v105_v7  }

// kernel: encoder_forward.5
= control target key start
LH: loop header
LB: loop body
LE: loop exit
PB: predicated region body
PF: predicated region fallthrough
CT: control target
= control target key end

     0   :  { %vm19_vm0 = vcmask 254976   ;;  %v1118_v0 = vmov 0.0   ;;  %vm1119_vm1 = vmmov 0   ;;  %vm51_vm2 = vcmask 261120   ;;  %s1120_s20 = smov 64   ;;  %s1121_s21 = smov 32   ;;  %s1377_s1 = inlined_call_operand.vmem [shape: bf16[32,128], index: 1, kind: input, shape index: {}]   ;;  %s1378_s0 = inlined_call_operand.vmem [shape: bf16[8,2,128], index: 0, kind: input, shape index: {}]   ;;  %s1379_s2 = inlined_call_operand.vmem [shape: f32[1,128], index: 2, kind: input, shape index: {}]   ;;  %s1380_s3 = inlined_call_operand.vmem [shape: f32[8,2,32], index: 3, kind: output, shape index: {}]  }
   0x1   :  { %968 = vmatprep.subr.bf16.mxu0 %v1118_v0  ;;  %v1038_v1 = vld [vmem:[%s1377_s1] sm:$0xff]   ;;  %972 = vmatprep.mubr.msk.bf16.mxu0 %vm1119_vm1, %v1118_v0  ;;  %20 = vst.msk [vmem:[#allocation2] sm:$0x3] %vm19_vm0, %v1118_v0  ;;  %21 = vst.msk [vmem:[#allocation3] sm:$0x3] %vm19_vm0, %v1118_v0  ;;  %v1039_v2 = vld [vmem:[%s1377_s1 + $0x8] sm:$0xff]  }
   0x2   :  { %976 = vmatprep.subr.bf16.mxu1 %v1118_v0  ;;  %980 = vmatprep.mubr.msk.bf16.mxu1 %vm1119_vm1, %v1118_v0  ;;  %v25_v5 = vld [vmem:[%s1378_s0] sm:$0x1]  ;;  %v1041_v27 = vld [vmem:[%s1377_s1 + $0x8] sm:$0xff]   ;;  %v902_v33 = vld [vmem:[%s1378_s0 + $0x1] sm:$0x1]  ;;  %s1123_s10 = smov 96  }
   0x3   :  { %969 = vmatpush3.bf16.msra.mxu0 %v1038_v1  ;;  %v26_v6 = vunpack.c.l.bf16 %v25_v5  ;;  %v1171_v7 = vld [vmem:[%s1379_s2] ss:$0 sm:$0xff]  ;;  %v146_v34 = vunpack.c.l.bf16 %v902_v33  ;;  %v1043_v52 = vld [vmem:[%s1377_s1 + $0x8] sm:$0xff]   ;;  %v908_v58 = vld [vmem:[%s1378_s0 + $0x2] sm:$0x1] }
   0x4   :  { %970 = vmatprep.subr.bf16.mxu0 %v1118_v0  ;;  %v1040_v26 = vld [vmem:[%s1377_s1] sm:$0xff]   ;;  %v251_v59 = vunpack.c.l.bf16 %v908_v58 }
   0x5   :  { %v33_v8 = vadd.f32 %v1171_v7, %v26_v6  ;;  %977 = vmatpush3.bf16.msra.mxu1 %v1040_v26  ;;  %v147_v35 = vadd.f32 %v1171_v7, %v146_v34  ;;  %v1042_v51 = vld [vmem:[%s1377_s1] sm:$0xff]  }
   0x6   :  { %978 = vmatprep.subr.bf16.mxu1 %v1118_v0  ;;  %v252_v60 = vadd.f32 %v1171_v7, %v251_v59 }
   0x7   :  { %971 = vmatpush3.bf16.msra.mxu0 %v1039_v2 }
   0x8   :  { %v23_v3 = vld [vmem:[#allocation2] sm:$0x3]  ;;  %984 = vmatprep.subr.bf16.mxu0 %v1118_v0  ;;  %v901_v15 = vld.sshfl [vmem:[#allocation3] sm:$0x3 pattern:$0x76325410] }
   0x9   :  { %v34_v4 = vpack.c.bf16 %v23_v3, %v23_v3  ;;  %979 = vmatpush3.bf16.msra.mxu1 %v1041_v27 }
   0xa   :  { %992 = vmatprep.subr.bf16.mxu1 %v1118_v0 }
   0xb   :  { %973 = vmatmul.mubr.msk.bf16.vlgmr.msra.gmra.mrb[0].mxu0 %vm51_vm2, %v34_v4 }
   0xc   :  { %988 = vmatprep.mubr.msk.bf16.mxu0 %vm1119_vm1, %v1118_v0  ;;  %985 = vmatpush3.bf16.msra.mxu0 %v1042_v51 }
   0xd   :  { %986 = vmatprep.subr.bf16.mxu0 %v1118_v0 }
  0x10   :  { %987 = vmatpush3.bf16.msra.mxu0 %v1043_v52 }
  0x11   :  { %1000 = vmatprep.subr.bf16.mxu0 %v1118_v0 }
  0xde   :  { %v89_v9 = vpop.f32.mrb[0].mxu0 }
  0xdf   :  { %v95_v10 = vadd.f32 %v89_v9, %v33_v8  ;;  %v974_v11 = vpop.f32.mrb[1].mxu0 }
  0xe0   :  { %v92_v12 = vpop.f32.mrb[2].mxu0 }
  0xe1   :  { %1054 = vtanh.f32 %v95_v10  ;;  %v975_v13 = vpop.f32.mrb[3].mxu0  ;;  %v900_v16 = vmul.f32 -1.442695, %v95_v10 }
  0xe3   :  { %1056 = vpow2.f32 %v900_v16 }
  0xeb   :  { %v1055_v14 = vpop.eup %1054 }
  0xec   :  { %116 = vrot.lane.b32.xlu0 %v1055_v14, %s1120_s20  ;;  %v1044_v14 = vld [vmem:[%s1377_s1] sm:$0xff]  }
  0xed   :  { %v1057_v17 = vpop.eup %1056 }
  0xee   :  { %v99_v18 = vadd.f32 1.0, %v1057_v17 }
  0xf0   :  { %111 = vrot.lane.b32.xlu0 %v901_v15, %s1121_s21  ;;  %1058 = vrcp.f32 %v99_v18  ;;  %v1045_v15 = vld [vmem:[%s1377_s1 + $0x8] sm:$0xff]  }
  0xfa   :  { %v1059_v19 = vpop.eup %1058 }
 0x15e   :  { %v117_v20 = vpop.permute.xlu0 %116 }
 0x15f   :  { %v119_v21 = vmul.f32 %v1059_v19, %v117_v20 }
 0x161   :  { %121 = vrot.lane.b32.xlu1 %v119_v21, %s1121_s21  ;;  %v914_v21 = vld [vmem:[%s1378_s0 + $0x3] sm:$0x1] }
 0x162   :  { %v112_v22 = vpop.permute.xlu0 %111 }
 0x163   :  { %v114_v23 = vmul.f32 %v1059_v19, %v112_v22  ;;  %v356_v22 = vunpack.c.l.bf16 %v914_v21 }
 0x1d3   :  { %v122_v24 = vpop.permute.xlu1 %121 }
 0x1d4   :  { %v124_v25 = vadd.f32 %v122_v24, %v114_v23  ;;  %v357_v23 = vadd.f32 %v1171_v7, %v356_v22 }
 0x1d6   :  { %1060 = vtanh.f32 %v124_v25 }
 0x1e0   :  { %v1061_v28 = vpop.eup %1060 }
 0x1e1   :  { %127 = vrot.lane.b32.xlu1 %v1061_v28, %s1120_s20 }
 0x253   :  { %v128_v29 = vpop.permute.xlu1 %127 }
 0x254   :  { %v1186_v30 = vmul.f32 %v1059_v19, %v128_v29 }
 0x256   :  { %v148_v31 = vpack.c.bf16 %v1186_v30, %v1186_v30 }
 0x258   :  { %154 = vrot.lane.b32.xlu0 %v148_v31, %s1121_s21 }
 0x2ca   :  { %v155_v32 = vpop.permute.xlu0 %154 }
 0x2cb   :  { %981 = vmatmul.mubr.msk.bf16.vlgmr.msra.gmra.mrb[0].mxu1 %vm51_vm2, %v155_v32 }
 0x2cc   :  { %996 = vmatprep.mubr.msk.bf16.mxu1 %vm1119_vm1, %v1118_v0  ;;  %993 = vmatpush3.bf16.msra.mxu1 %v1044_v14 }
 0x2cd   :  { %994 = vmatprep.subr.bf16.mxu1 %v1118_v0 }
 0x2d0   :  { %995 = vmatpush3.bf16.msra.mxu1 %v1045_v15 }
 0x2d1   :  { %1008 = vmatprep.subr.bf16.mxu1 %v1118_v0 }
 0x39e   :  { %v205_v36 = vpop.f32.mrb[0].mxu1 }
 0x39f   :  { %v211_v37 = vadd.f32 %v205_v36, %v147_v35  ;;  %v982_v38 = vpop.f32.mrb[1].mxu1 }
 0x3a0   :  { %v208_v39 = vpop.f32.mrb[2].mxu1 }
 0x3a1   :  { %1062 = vtanh.f32 %v211_v37  ;;  %v983_v40 = vpop.f32.mrb[3].mxu1  ;;  %v906_v42 = vmul.f32 -1.442695, %v211_v37 }
 0x3a2   :  { %v1046_v40 = vld [vmem:[%s1377_s1] sm:$0xff]  }
 0x3a3   :  { %1064 = vpow2.f32 %v906_v42 }
 0x3ab   :  { %v1063_v41 = vpop.eup %1062 }
 0x3ac   :  { %221 = vrot.lane.b32.xlu1 %v1063_v41, %s1120_s20  ;;  %v1047_v41 = vld [vmem:[%s1377_s1 + $0x8] sm:$0xff]  }
 0x3ad   :  { %v1065_v43 = vpop.eup %1064 }
 0x3ae   :  { %v215_v44 = vadd.f32 1.0, %v1065_v43 }
 0x3b0   :  { %1066 = vrcp.f32 %v215_v44 }
 0x3ba   :  { %v1067_v45 = vpop.eup %1066 }
 0x3bb   :  { %v219_v48 = vmul.f32 %v1067_v45, %v124_v25 }
 0x41e   :  { %v222_v46 = vpop.permute.xlu1 %221 }
 0x41f   :  { %v224_v47 = vmul.f32 %v1067_v45, %v222_v46 }
 0x421   :  { %226 = vrot.lane.b32.xlu0 %v224_v47, %s1121_s21  ;;  %v920_v47 = vld [vmem:[%s1378_s0 + $0x4] sm:$0x1] }
 0x493   :  { %v227_v49 = vpop.permute.xlu0 %226 }
 0x494   :  { %v229_v50 = vadd.f32 %v227_v49, %v219_v48  ;;  %v461_v48 = vunpack.c.l.bf16 %v920_v47 }
 0x496   :  { %1068 = vtanh.f32 %v229_v50  ;;  %v462_v49 = vadd.f32 %v1171_v7, %v461_v48 }
 0x4a0   :  { %v1069_v53 = vpop.eup %1068 }
 0x4a1   :  { %232 = vrot.lane.b32.xlu1 %v1069_v53, %s1120_s20 }
 0x513   :  { %v233_v54 = vpop.permute.xlu1 %232 }
 0x514   :  { %v1209_v55 = vmul.f32 %v1067_v45, %v233_v54 }
 0x516   :  { %v253_v56 = vpack.c.bf16 %v1209_v55, %v1209_v55 }
 0x518   :  { %259 = vrot.lane.b32.xlu0 %v253_v56, %s1121_s21 }
 0x58a   :  { %v260_v57 = vpop.permute.xlu0 %259 }
 0x58b   :  { %989 = vmatmul.mubr.msk.bf16.vlgmr.msra.gmra.mrb[4].mxu0 %vm51_vm2, %v260_v57 }
 0x58c   :  { %1004 = vmatprep.mubr.msk.bf16.mxu0 %vm1119_vm1, %v1118_v0  ;;  %1001 = vmatpush3.bf16.msra.mxu0 %v1046_v40 }
 0x58d   :  { %1002 = vmatprep.subr.bf16.mxu0 %v1118_v0 }
 0x590   :  { %1003 = vmatpush3.bf16.msra.mxu0 %v1047_v41 }
 0x591   :  { %1016 = vmatprep.subr.bf16.mxu0 %v1118_v0 }
 0x65e   :  { %v310_v61 = vpop.f32.mrb[4].mxu0 }
 0x65f   :  { %v316_v62 = vadd.f32 %v310_v61, %v252_v60  ;;  %v990_v63 = vpop.f32.mrb[5].mxu0 }
 0x660   :  { %v313_v1 = vpop.f32.mrb[6].mxu0 }
 0x661   :  { %1070 = vtanh.f32 %v316_v62  ;;  %v991_v2 = vpop.f32.mrb[7].mxu0  ;;  %v912_v4 = vmul.f32 -1.442695, %v316_v62 }
 0x663   :  { %1072 = vpow2.f32 %v912_v4  ;;  %v1049_v4 = vld [vmem:[%s1377_s1 + $0x8] sm:$0xff]  }
 0x66b   :  { %v1071_v3 = vpop.eup %1070 }
 0x66c   :  { %326 = vrot.lane.b32.xlu1 %v1071_v3, %s1120_s20  ;;  %v1048_v3 = vld [vmem:[%s1377_s1] sm:$0xff]  }
 0x66d   :  { %v1073_v5 = vpop.eup %1072 }
 0x66e   :  { %v320_v6 = vadd.f32 1.0, %v1073_v5 }
 0x670   :  { %1074 = vrcp.f32 %v320_v6 }
 0x67a   :  { %v1075_v8 = vpop.eup %1074 }
 0x67b   :  { %v324_v11 = vmul.f32 %v1075_v8, %v229_v50 }
 0x6de   :  { %v327_v9 = vpop.permute.xlu1 %326 }
 0x6df   :  { %v329_v10 = vmul.f32 %v1075_v8, %v327_v9 }
 0x6e1   :  { %331 = vrot.lane.b32.xlu0 %v329_v10, %s1121_s21 }
 0x753   :  { %v332_v12 = vpop.permute.xlu0 %331 }
 0x754   :  { %v334_v13 = vadd.f32 %v332_v12, %v324_v11  ;;  %v926_v11 = vld [vmem:[%s1378_s0 + $0x5] sm:$0x1] }
 0x755   :  { %v566_v12 = vunpack.c.l.bf16 %v926_v11 }
 0x756   :  { %1076 = vtanh.f32 %v334_v13 }
 0x760   :  { %v1077_v16 = vpop.eup %1076 }
 0x761   :  { %337 = vrot.lane.b32.xlu1 %v1077_v16, %s1120_s20 }
 0x7d3   :  { %v338_v17 = vpop.permute.xlu1 %337 }
 0x7d4   :  { %v1232_v18 = vmul.f32 %v1075_v8, %v338_v17 }
 0x7d6   :  { %v358_v19 = vpack.c.bf16 %v1232_v18, %v1232_v18 }
 0x7d8   :  { %364 = vrot.lane.b32.xlu0 %v358_v19, %s1121_s21 }
 0x84a   :  { %v365_v20 = vpop.permute.xlu0 %364 }
 0x84b   :  { %997 = vmatmul.mubr.msk.bf16.vlgmr.msra.gmra.mrb[4].mxu1 %vm51_vm2, %v365_v20 }
 0x84c   :  { %1012 = vmatprep.mubr.msk.bf16.mxu1 %vm1119_vm1, %v1118_v0  ;;  %1009 = vmatpush3.bf16.msra.mxu1 %v1048_v3 }
 0x84d   :  { %1010 = vmatprep.subr.bf16.mxu1 %v1118_v0 }
 0x850   :  { %1011 = vmatpush3.bf16.msra.mxu1 %v1049_v4 }
 0x851   :  { %1024 = vmatprep.subr.bf16.mxu1 %v1118_v0 }
 0x91e   :  { %v415_v24 = vpop.f32.mrb[4].mxu1 }
 0x91f   :  { %v421_v25 = vadd.f32 %v415_v24, %v357_v23  ;;  %v998_v26 = vpop.f32.mrb[5].mxu1 }
 0x920   :  { %v418_v27 = vpop.f32.mrb[6].mxu1 }
 0x921   :  { %1078 = vtanh.f32 %v421_v25  ;;  %v999_v28 = vpop.f32.mrb[7].mxu1  ;;  %v918_v31 = vmul.f32 -1.442695, %v421_v25 }
 0x923   :  { %1080 = vpow2.f32 %v918_v31  ;;  %v1050_v31 = vld [vmem:[%s1377_s1] sm:$0xff]  }
 0x92b   :  { %v1079_v29 = vpop.eup %1078 }
 0x92c   :  { %431 = vrot.lane.b32.xlu1 %v1079_v29, %s1120_s20 }
 0x92d   :  { %v1081_v32 = vpop.eup %1080 }
 0x92e   :  { %v425_v33 = vadd.f32 1.0, %v1081_v32  ;;  %v1051_v32 = vld [vmem:[%s1377_s1 + $0x8] sm:$0xff]  }
 0x930   :  { %1082 = vrcp.f32 %v425_v33 }
 0x93a   :  { %v1083_v34 = vpop.eup %1082 }
 0x93b   :  { %v429_v37 = vmul.f32 %v1083_v34, %v334_v13  ;;  %v567_v13 = vadd.f32 %v1171_v7, %v566_v12 }
 0x99e   :  { %v432_v35 = vpop.permute.xlu1 %431 }
 0x99f   :  { %v434_v36 = vmul.f32 %v1083_v34, %v432_v35 }
 0x9a1   :  { %436 = vrot.lane.b32.xlu0 %v434_v36, %s1121_s21 }
 0xa13   :  { %v437_v38 = vpop.permute.xlu0 %436 }
 0xa14   :  { %v439_v39 = vadd.f32 %v437_v38, %v429_v37  ;;  %v932_v38 = vld [vmem:[%s1378_s0 + $0x6] sm:$0x1] }
 0xa16   :  { %1084 = vtanh.f32 %v439_v39 }
 0xa20   :  { %v1085_v42 = vpop.eup %1084 }
 0xa21   :  { %442 = vrot.lane.b32.xlu1 %v1085_v42, %s1120_s20 }
 0xa93   :  { %v443_v43 = vpop.permute.xlu1 %442 }
 0xa94   :  { %v1255_v44 = vmul.f32 %v1083_v34, %v443_v43 }
 0xa96   :  { %v463_v45 = vpack.c.bf16 %v1255_v44, %v1255_v44 }
 0xa98   :  { %469 = vrot.lane.b32.xlu0 %v463_v45, %s1121_s21 }
 0xb0a   :  { %v470_v46 = vpop.permute.xlu0 %469 }
 0xb0b   :  { %1005 = vmatmul.mubr.msk.bf16.vlgmr.msra.gmra.mrb[8].mxu0 %vm51_vm2, %v470_v46 }
 0xb0c   :  { %1020 = vmatprep.mubr.msk.bf16.mxu0 %vm1119_vm1, %v1118_v0  ;;  %1017 = vmatpush3.bf16.msra.mxu0 %v1050_v31 }
 0xb0d   :  { %1018 = vmatprep.subr.bf16.mxu0 %v1118_v0 }
 0xb10   :  { %1019 = vmatpush3.bf16.msra.mxu0 %v1051_v32 }
 0xbde   :  { %v520_v50 = vpop.f32.mrb[8].mxu0 }
 0xbdf   :  { %v526_v51 = vadd.f32 %v520_v50, %v462_v49  ;;  %v1006_v52 = vpop.f32.mrb[9].mxu0 }
 0xbe0   :  { %v523_v53 = vpop.f32.mrb[10].mxu0 }
 0xbe1   :  { %1086 = vtanh.f32 %v526_v51  ;;  %v1007_v54 = vpop.f32.mrb[11].mxu0  ;;  %v924_v57 = vmul.f32 -1.442695, %v526_v51 }
 0xbe3   :  { %1088 = vpow2.f32 %v924_v57 }
 0xbeb   :  { %v1087_v56 = vpop.eup %1086 }
 0xbec   :  { %536 = vrot.lane.b32.xlu1 %v1087_v56, %s1120_s20 }
 0xbed   :  { %v1089_v58 = vpop.eup %1088 }
 0xbee   :  { %v530_v59 = vadd.f32 1.0, %v1089_v58  ;;  %v1052_v58 = vld [vmem:[%s1377_s1] sm:$0xff]  }
 0xbf0   :  { %1090 = vrcp.f32 %v530_v59  ;;  %v1053_v59 = vld [vmem:[%s1377_s1 + $0x8] sm:$0xff]  }
 0xbfa   :  { %v1091_v60 = vpop.eup %1090 }
 0xbfb   :  { %v534_v63 = vmul.f32 %v1091_v60, %v439_v39  ;;  %v671_v39 = vunpack.c.l.bf16 %v932_v38 }
 0xbfd   :  { %v672_v40 = vadd.f32 %v1171_v7, %v671_v39 }
 0xc5e   :  { %v537_v61 = vpop.permute.xlu1 %536 }
 0xc5f   :  { %v539_v62 = vmul.f32 %v1091_v60, %v537_v61 }
 0xc61   :  { %541 = vrot.lane.b32.xlu0 %v539_v62, %s1121_s21 }
 0xcd3   :  { %v542_v1 = vpop.permute.xlu0 %541 }
 0xcd4   :  { %v544_v2 = vadd.f32 %v542_v1, %v534_v63 }
 0xcd6   :  { %1092 = vtanh.f32 %v544_v2 }
 0xce0   :  { %v1093_v5 = vpop.eup %1092 }
 0xce1   :  { %547 = vrot.lane.b32.xlu1 %v1093_v5, %s1120_s20 }
 0xd53   :  { %v548_v6 = vpop.permute.xlu1 %547 }
 0xd54   :  { %v1278_v8 = vmul.f32 %v1091_v60, %v548_v6 }
 0xd56   :  { %v568_v9 = vpack.c.bf16 %v1278_v8, %v1278_v8 }
 0xd58   :  { %574 = vrot.lane.b32.xlu0 %v568_v9, %s1121_s21 }
 0xdca   :  { %v575_v10 = vpop.permute.xlu0 %574 }
 0xdcb   :  { %1013 = vmatmul.mubr.msk.bf16.vlgmr.msra.gmra.mrb[8].mxu1 %vm51_vm2, %v575_v10 }
 0xdcc   :  { %1028 = vmatprep.mubr.msk.bf16.mxu1 %vm1119_vm1, %v1118_v0  ;;  %1025 = vmatpush3.bf16.msra.mxu1 %v1052_v58 }
 0xdcd   :  { %1026 = vmatprep.subr.bf16.mxu1 %v1118_v0 }
 0xdd0   :  { %1027 = vmatpush3.bf16.msra.mxu1 %v1053_v59 }
 0xe9e   :  { %v625_v14 = vpop.f32.mrb[8].mxu1 }
 0xe9f   :  { %v631_v15 = vadd.f32 %v625_v14, %v567_v13  ;;  %v1014_v16 = vpop.f32.mrb[9].mxu1 }
 0xea0   :  { %v628_v17 = vpop.f32.mrb[10].mxu1 }
 0xea1   :  { %1094 = vtanh.f32 %v631_v15  ;;  %v1015_v19 = vpop.f32.mrb[11].mxu1  ;;  %v930_v21 = vmul.f32 -1.442695, %v631_v15  ;;  %v1122_v15 = vmov 1983009808   ;;  %v135_v17 = vlaneseq }
 0xea2   :  { %v133_v16 = vunpack.c.l.s4 %v1122_v15 }
 0xea3   :  { %1096 = vpow2.f32 %v930_v21 }
 0xea4   :  { %v134_v19 = vunpack.c.0.s8 %v133_v16 }
 0xeab   :  { %v1095_v20 = vpop.eup %1094 }
 0xeac   :  { %641 = vrot.lane.b32.xlu1 %v1095_v20, %s1120_s20  ;;  %v136_v20 = vshrl.u32 %v135_v17, 7 }
 0xead   :  { %v1097_v22 = vpop.eup %1096 }
 0xeae   :  { %v635_v23 = vadd.f32 1.0, %v1097_v22  ;;  %v137_v22 = vsub.s32 %v134_v19, %v136_v20 }
 0xeb0   :  { %1098 = vrcp.f32 %v635_v23 }
 0xeba   :  { %v1099_v24 = vpop.eup %1098 }
 0xebb   :  { %v639_v27 = vmul.f32 %v1099_v24, %v544_v2  ;;  %v938_v2 = vld [vmem:[%s1378_s0 + $0x7] sm:$0x1] }
 0xebc   :  { %v776_v3 = vunpack.c.l.bf16 %v938_v2 }
 0xebe   :  { %v777_v4 = vadd.f32 %v1171_v7, %v776_v3 }
 0xf1e   :  { %v642_v25 = vpop.permute.xlu1 %641 }
 0xf1f   :  { %v644_v26 = vmul.f32 %v1099_v24, %v642_v25  ;;  %v348_v25 = vrot.slane %v1232_v18, %v137_v22 }
 0xf21   :  { %646 = vrot.lane.b32.xlu0 %v644_v26, %s1121_s21  ;;  %v558_v26 = vrot.slane %v1278_v8, %v137_v22 }
 0xf93   :  { %v647_v28 = vpop.permute.xlu0 %646 }
 0xf94   :  { %v649_v29 = vadd.f32 %v647_v28, %v639_v27 }
 0xf96   :  { %1100 = vtanh.f32 %v649_v29 }
 0xfa0   :  { %v1101_v33 = vpop.eup %1100 }
 0xfa1   :  { %652 = vrot.lane.b32.xlu1 %v1101_v33, %s1120_s20 }
0x1013   :  { %v653_v34 = vpop.permute.xlu1 %652 }
0x1014   :  { %v1300_v35 = vmul.f32 %v1099_v24, %v653_v34  ;;  %v138_v24 = vrot.slane %v1186_v30, %v137_v22  ;;  %v243_v34 = vrot.slane %v1209_v55, %v137_v22 }
0x1016   :  { %v673_v36 = vpack.c.bf16 %v1300_v35, %v1300_v35  ;;  %v663_v38 = vrot.slane %v1300_v35, %v137_v22 }
0x1018   :  { %679 = vrot.lane.b32.xlu0 %v673_v36, %s1121_s21 }
0x108a   :  { %v680_v37 = vpop.permute.xlu0 %679 }
0x108b   :  { %1021 = vmatmul.mubr.msk.bf16.vlgmr.msra.gmra.mrb[12].mxu0 %vm51_vm2, %v680_v37  ;;  %v453_v37 = vrot.slane %v1255_v44, %v137_v22 }
0x115e   :  { %v730_v41 = vpop.f32.mrb[12].mxu0 }
0x115f   :  { %v736_v42 = vadd.f32 %v730_v41, %v672_v40  ;;  %v1022_v43 = vpop.f32.mrb[13].mxu0 }
0x1160   :  { %v733_v45 = vpop.f32.mrb[14].mxu0 }
0x1161   :  { %1102 = vtanh.f32 %v736_v42  ;;  %v1023_v46 = vpop.f32.mrb[15].mxu0  ;;  %v936_v48 = vmul.f32 -1.442695, %v736_v42 }
0x1163   :  { %1104 = vpow2.f32 %v936_v48 }
0x116b   :  { %v1103_v47 = vpop.eup %1102 }
0x116c   :  { %746 = vrot.lane.b32.xlu1 %v1103_v47, %s1120_s20 }
0x116d   :  { %v1105_v49 = vpop.eup %1104 }
0x116e   :  { %v740_v50 = vadd.f32 1.0, %v1105_v49 }
0x1170   :  { %1106 = vrcp.f32 %v740_v50 }
0x117a   :  { %v1107_v51 = vpop.eup %1106 }
0x117b   :  { %v744_v54 = vmul.f32 %v1107_v51, %v649_v29 }
0x11de   :  { %v747_v52 = vpop.permute.xlu1 %746 }
0x11df   :  { %v749_v53 = vmul.f32 %v1107_v51, %v747_v52 }
0x11e1   :  { %751 = vrot.lane.b32.xlu0 %v749_v53, %s1121_s21 }
0x1253   :  { %v752_v56 = vpop.permute.xlu0 %751 }
0x1254   :  { %v754_v57 = vadd.f32 %v752_v56, %v744_v54 }
0x1256   :  { %1108 = vtanh.f32 %v754_v57 }
0x1260   :  { %v1109_v60 = vpop.eup %1108 }
0x1261   :  { %757 = vrot.lane.b32.xlu1 %v1109_v60, %s1120_s20 }
0x12d3   :  { %v758_v61 = vpop.permute.xlu1 %757 }
0x12d4   :  { %v760_v62 = vmul.f32 %v1107_v51, %v758_v61 }
0x12d6   :  { %v778_v63 = vpack.c.bf16 %v760_v62, %v760_v62  ;;  %v768_v27 = vrot.slane %v760_v62, %v137_v22 }
0x12d8   :  { %784 = vrot.lane.b32.xlu0 %v778_v63, %s1121_s21 }
0x134a   :  { %v785_v1 = vpop.permute.xlu0 %784 }
0x134b   :  { %1029 = vmatmul.mubr.msk.bf16.vlgmr.msra.gmra.mrb[12].mxu1 %vm51_vm2, %v785_v1 }
0x141e   :  { %v835_v0 = vpop.f32.mrb[12].mxu1 }
0x141f   :  { %v841_v5 = vadd.f32 %v835_v0, %v777_v4  ;;  %v1030_v6 = vpop.f32.mrb[13].mxu1 }
0x1420   :  { %v838_v9 = vpop.f32.mrb[14].mxu1 }
0x1421   :  { %1110 = vtanh.f32 %v841_v5  ;;  %v1031_v10 = vpop.f32.mrb[15].mxu1  ;;  %v942_v12 = vmul.f32 -1.442695, %v841_v5 }
0x1423   :  { %1112 = vpow2.f32 %v942_v12 }
0x142b   :  { %v1111_v11 = vpop.eup %1110 }
0x142c   :  { %851 = vrot.lane.b32.xlu1 %v1111_v11, %s1120_s20 }
0x142d   :  { %v1113_v13 = vpop.eup %1112 }
0x142e   :  { %v845_v14 = vadd.f32 1.0, %v1113_v13 }
0x1430   :  { %1114 = vrcp.f32 %v845_v14 }
0x143a   :  { %v1115_v7 = vpop.eup %1114 }
0x143b   :  { %v849_v28 = vmul.f32 %v1115_v7, %v754_v57 }
0x149e   :  { %v852_v21 = vpop.permute.xlu1 %851 }
0x149f   :  { %v854_v23 = vmul.f32 %v1115_v7, %v852_v21 }
0x14a1   :  { %856 = vrot.lane.b32.xlu0 %v854_v23, %s1121_s21 }
0x14a5   :  { %139 = vrot.lane.b32.xlu0 %v138_v24, %s1121_s21 }
0x14a9   :  { %349 = vrot.lane.b32.xlu0 %v348_v25, %s1121_s21 }
0x14ad   :  { %559 = vrot.lane.b32.xlu0 %v558_v26, %s1121_s21 }
0x14b1   :  { %769 = vrot.lane.b32.xlu0 %v768_v27, %s1121_s21 }
0x1513   :  { %v857_v29 = vpop.permute.xlu0 %856 }
0x1514   :  { %v859_v31 = vadd.f32 %v857_v29, %v849_v28 }
0x1516   :  { %1116 = vtanh.f32 %v859_v31  ;;  %v887_v32 = vrot.slane %v859_v31, %v137_v22 }
0x1517   :  { %v140_v33 = vpop.permute.xlu0 %139 }
0x1518   :  { %143 = vst.msk [vmem:[%s1380_s3] sm:$0x3] %vm19_vm0, %v140_v33  ;;  %888 = vrot.lane.b32.xlu0 %v887_v32, %s1123_s10 }
0x151b   :  { %v350_v30 = vpop.permute.xlu0 %349 }
0x151c   :  { %913 = vst.msk [vmem:[%s1380_s3 + $0x4] sm:$0x3] %vm19_vm0, %v350_v30 }
0x151f   :  { %v560_v18 = vpop.permute.xlu0 %559 }
0x1520   :  { %v1117_v8 = vpop.eup %1116  ;;  %925 = vst.msk [vmem:[%s1380_s3 + $0x8] sm:$0x3] %vm19_vm0, %v560_v18 }
0x1521   :  { %862 = vrot.lane.b32.xlu1 %v1117_v8, %s1120_s20 }
0x1523   :  { %v770_v36 = vpop.permute.xlu0 %769 }
0x1524   :  { %937 = vst.msk [vmem:[%s1380_s3 + $0xc] sm:$0x3] %vm19_vm0, %v770_v36 }
0x1525   :  { %244 = vrot.lane.b32.xlu1 %v243_v34, %s1121_s21 }
0x1529   :  { %454 = vrot.lane.b32.xlu1 %v453_v37, %s1121_s21 }
0x152d   :  { %664 = vrot.lane.b32.xlu1 %v663_v38, %s1121_s21 }
0x158a   :  { %v889_v39 = vpop.permute.xlu0 %888 }
0x158b   :  { %891 = vst.msk [vmem:[#allocation3] sm:$0x3] %vm19_vm0, %v889_v39 }
0x1593   :  { %v863_v55 = vpop.permute.xlu1 %862 }
0x1594   :  { %v865_v40 = vmul.f32 %v1115_v7, %v863_v55 }
0x1596   :  { %v873_v41 = vrot.slane %v865_v40, %v137_v22 }
0x1597   :  { %v245_v42 = vpop.permute.xlu1 %244 }
0x1598   :  { %907 = vst.msk [vmem:[%s1380_s3 + $0x2] sm:$0x3] %vm19_vm0, %v245_v42  ;;  %874 = vrot.lane.b32.xlu1 %v873_v41, %s1121_s21 }
0x159b   :  { %v455_v44 = vpop.permute.xlu1 %454 }
0x159c   :  { %919 = vst.msk [vmem:[%s1380_s3 + $0x6] sm:$0x3] %vm19_vm0, %v455_v44 }
0x159f   :  { %v665_v35 = vpop.permute.xlu1 %664 }
0x15a0   :  { %931 = vst.msk [vmem:[%s1380_s3 + $0xa] sm:$0x3] %vm19_vm0, %v665_v35 }
0x160a   :  { %v875_v43 = vpop.permute.xlu1 %874 }
0x160b   :  { %943 = vst.msk [vmem:[%s1380_s3 + $0xe] sm:$0x3] %vm19_vm0, %v875_v43  ;;  %879 = vst.msk [vmem:[#allocation2] sm:$0x3] %vm19_vm0, %v875_v43 }

// kernel: encoder_forward.7
= control target key start
LH: loop header
LB: loop body
LE: loop exit
PB: predicated region body
PF: predicated region fallthrough
CT: control target
= control target key end

     0   :  { %v1260_v1 = vmov 0.0   ;;  %vm1261_vm0 = vmmov 0   ;;  %vm20_vm1 = vcmask 254976   ;;  %vm52_vm2 = vcmask 261120   ;;  %s1570_s0 = inlined_call_operand.vmem [shape: bf16[8,2,128], index: 0, kind: input, shape index: {}]   ;;  %s1571_s1 = inlined_call_operand.vmem [shape: bf16[32,128], index: 1, kind: input, shape index: {}]   ;;  %s1572_s2 = inlined_call_operand.vmem [shape: f32[1,128], index: 2, kind: input, shape index: {}]   ;;  %s1573_s3 = inlined_call_operand.hbm [shape: f32[2,8,32], index: 3, kind: output, shape index: {}]  }
   0x1   :  { %v1156_v0 = vld [vmem:[%s1571_s1] sm:$0xff]   ;;  %1082 = vmatprep.subr.bf16.mxu0 %v1260_v1  ;;  %1090 = vmatprep.subr.bf16.mxu1 %v1260_v1  ;;  %v1157_v2 = vld [vmem:[%s1571_s1 + $0x8] sm:$0xff]   ;;  %21 = vst.msk [vmem:[#allocation2] sm:$0x3] %vm20_vm1, %v1260_v1  ;;  %22 = vst.msk [vmem:[#allocation3] sm:$0x3] %vm20_vm1, %v1260_v1 }
   0x2   :  { %1083 = vmatpush3.bf16.msra.mxu0 %v1156_v0  ;;  %1086 = vmatprep.mubr.msk.bf16.mxu0 %vm1261_vm0, %v1260_v1 }
   0x3   :  { %1084 = vmatprep.subr.bf16.mxu0 %v1260_v1  ;;  %1094 = vmatprep.mubr.msk.bf16.mxu1 %vm1261_vm0, %v1260_v1 }
   0x6   :  { %1085 = vmatpush3.bf16.msra.mxu0 %v1157_v2 }
   0x7   :  { %1098 = vmatprep.subr.bf16.mxu0 %v1260_v1 }
   0x8   :  { %v24_v3 = vld [vmem:[#allocation2] sm:$0x3] }
   0x9   :  { %v35_v4 = vpack.c.bf16 %v24_v3, %v24_v3 }
   0xa   :  { %8 = vsyncpa [#allocation5], 0  ;;  %v26_v5 = vld [vmem:[%s1570_s0] sm:$0x1]  ;;  %s1262_s20 = smov 64   ;;  %s1263_s21 = smov 32  }
   0xb   :  { %1087 = vmatmul.mubr.msk.bf16.vlgmr.msra.gmra.mrb[0].mxu0 %vm52_vm2, %v35_v4  ;;  %v27_v6 = vunpack.c.l.bf16 %v26_v5  ;;  %v1317_v7 = vld [vmem:[%s1572_s2] ss:$0 sm:$0xff]  ;;  %v1022_v15 = vld.sshfl [vmem:[#allocation3] sm:$0x3 pattern:$0x76325410] }
   0xc   :  { %1102 = vmatprep.mubr.msk.bf16.mxu0 %vm1261_vm0, %v1260_v1  ;;  %v1158_v26 = vld [vmem:[%s1571_s1] sm:$0xff]   ;;  %v1159_v27 = vld [vmem:[%s1571_s1 + $0x8] sm:$0xff]   ;;  %vm155_vm3 = vcmask 253952  }
   0xd   :  { %v34_v8 = vadd.f32 %v1317_v7, %v27_v6  ;;  %1091 = vmatpush3.bf16.msra.mxu1 %v1158_v26  ;;  %v1023_v33 = vld [vmem:[%s1570_s0 + $0x1] sm:$0x1]  ;;  %v1161_v52 = vld [vmem:[%s1571_s1 + $0x8] sm:$0xff]   ;;  %v1028_v58 = vld [vmem:[%s1570_s0 + $0x2] sm:$0x1] }
   0xe   :  { %1092 = vmatprep.subr.bf16.mxu1 %v1260_v1  ;;  %v160_v34 = vunpack.c.l.bf16 %v1023_v33  ;;  %v1160_v51 = vld [vmem:[%s1571_s1] sm:$0xff]   ;;  %v277_v59 = vunpack.c.l.bf16 %v1028_v58 }
   0xf   :  { %1099 = vmatpush3.bf16.msra.mxu0 %v1160_v51 }
  0x10   :  { %v161_v35 = vadd.f32 %v1317_v7, %v160_v34  ;;  %1100 = vmatprep.subr.bf16.mxu0 %v1260_v1  ;;  %v278_v60 = vadd.f32 %v1317_v7, %v277_v59 }
  0x11   :  { %1093 = vmatpush3.bf16.msra.mxu1 %v1159_v27 }
  0x12   :  { %1106 = vmatprep.subr.bf16.mxu1 %v1260_v1 }
  0x13   :  { %1101 = vmatpush3.bf16.msra.mxu0 %v1161_v52 }
  0x14   :  { %1114 = vmatprep.subr.bf16.mxu0 %v1260_v1 }
  0xde   :  { %v90_v9 = vpop.f32.mrb[0].mxu0 }
  0xdf   :  { %v96_v10 = vadd.f32 %v90_v9, %v34_v8  ;;  %v1088_v11 = vpop.f32.mrb[1].mxu0 }
  0xe0   :  { %v93_v12 = vpop.f32.mrb[2].mxu0 }
  0xe1   :  { %1172 = vtanh.f32 %v96_v10  ;;  %v1089_v13 = vpop.f32.mrb[3].mxu0  ;;  %v1021_v16 = vmul.f32 -1.442695, %v96_v10 }
  0xe3   :  { %1174 = vpow2.f32 %v1021_v16 }
  0xeb   :  { %v1173_v14 = vpop.eup %1172 }
  0xec   :  { %117 = vrot.lane.b32.xlu0 %v1173_v14, %s1262_s20  ;;  %v1162_v14 = vld [vmem:[%s1571_s1] sm:$0xff]  }
  0xed   :  { %v1175_v17 = vpop.eup %1174 }
  0xee   :  { %v100_v18 = vadd.f32 1.0, %v1175_v17 }
  0xf0   :  { %112 = vrot.lane.b32.xlu0 %v1022_v15, %s1263_s21  ;;  %1176 = vrcp.f32 %v100_v18  ;;  %v1163_v15 = vld [vmem:[%s1571_s1 + $0x8] sm:$0xff]  }
  0xfa   :  { %v1177_v19 = vpop.eup %1176 }
 0x15e   :  { %v118_v20 = vpop.permute.xlu0 %117 }
 0x15f   :  { %v120_v21 = vmul.f32 %v1177_v19, %v118_v20 }
 0x161   :  { %122 = vrot.lane.b32.xlu1 %v120_v21, %s1263_s21  ;;  %v1033_v21 = vld [vmem:[%s1570_s0 + $0x3] sm:$0x1] }
 0x162   :  { %v113_v22 = vpop.permute.xlu0 %112 }
 0x163   :  { %v115_v23 = vmul.f32 %v1177_v19, %v113_v22  ;;  %v394_v22 = vunpack.c.l.bf16 %v1033_v21 }
 0x1d3   :  { %v123_v24 = vpop.permute.xlu1 %122 }
 0x1d4   :  { %v125_v25 = vadd.f32 %v123_v24, %v115_v23  ;;  %v395_v23 = vadd.f32 %v1317_v7, %v394_v22 }
 0x1d6   :  { %1178 = vtanh.f32 %v125_v25 }
 0x1e0   :  { %v1179_v28 = vpop.eup %1178 }
 0x1e1   :  { %128 = vrot.lane.b32.xlu1 %v1179_v28, %s1262_s20 }
 0x253   :  { %v129_v29 = vpop.permute.xlu1 %128 }
 0x254   :  { %v1332_v30 = vmul.f32 %v1177_v19, %v129_v29 }
 0x256   :  { %v162_v31 = vpack.c.bf16 %v1332_v30, %v1332_v30 }
 0x258   :  { %168 = vrot.lane.b32.xlu0 %v162_v31, %s1263_s21 }
 0x2ca   :  { %v169_v32 = vpop.permute.xlu0 %168 }
 0x2cb   :  { %1095 = vmatmul.mubr.msk.bf16.vlgmr.msra.gmra.mrb[0].mxu1 %vm52_vm2, %v169_v32 }
 0x2cc   :  { %1110 = vmatprep.mubr.msk.bf16.mxu1 %vm1261_vm0, %v1260_v1  ;;  %1107 = vmatpush3.bf16.msra.mxu1 %v1162_v14 }
 0x2cd   :  { %1108 = vmatprep.subr.bf16.mxu1 %v1260_v1 }
 0x2d0   :  { %1109 = vmatpush3.bf16.msra.mxu1 %v1163_v15 }
 0x2d1   :  { %1122 = vmatprep.subr.bf16.mxu1 %v1260_v1 }
 0x39e   :  { %v219_v36 = vpop.f32.mrb[0].mxu1 }
 0x39f   :  { %v225_v37 = vadd.f32 %v219_v36, %v161_v35  ;;  %v1096_v38 = vpop.f32.mrb[1].mxu1 }
 0x3a0   :  { %v222_v39 = vpop.f32.mrb[2].mxu1 }
 0x3a1   :  { %1180 = vtanh.f32 %v225_v37  ;;  %v1097_v40 = vpop.f32.mrb[3].mxu1  ;;  %v1027_v42 = vmul.f32 -1.442695, %v225_v37 }
 0x3a2   :  { %v1164_v40 = vld [vmem:[%s1571_s1] sm:$0xff]  }
 0x3a3   :  { %1182 = vpow2.f32 %v1027_v42 }
 0x3ab   :  { %v1181_v41 = vpop.eup %1180 }
 0x3ac   :  { %235 = vrot.lane.b32.xlu1 %v1181_v41, %s1262_s20  ;;  %v1165_v41 = vld [vmem:[%s1571_s1 + $0x8] sm:$0xff]  }
 0x3ad   :  { %v1183_v43 = vpop.eup %1182 }
 0x3ae   :  { %v229_v44 = vadd.f32 1.0, %v1183_v43 }
 0x3b0   :  { %1184 = vrcp.f32 %v229_v44 }
 0x3ba   :  { %v1185_v45 = vpop.eup %1184 }
 0x3bb   :  { %v233_v48 = vmul.f32 %v1185_v45, %v125_v25 }
 0x41e   :  { %v236_v46 = vpop.permute.xlu1 %235 }
 0x41f   :  { %v238_v47 = vmul.f32 %v1185_v45, %v236_v46 }
 0x421   :  { %240 = vrot.lane.b32.xlu0 %v238_v47, %s1263_s21  ;;  %v1038_v47 = vld [vmem:[%s1570_s0 + $0x4] sm:$0x1] }
 0x493   :  { %v241_v49 = vpop.permute.xlu0 %240 }
 0x494   :  { %v243_v50 = vadd.f32 %v241_v49, %v233_v48  ;;  %v511_v48 = vunpack.c.l.bf16 %v1038_v47 }
 0x496   :  { %1186 = vtanh.f32 %v243_v50  ;;  %v512_v49 = vadd.f32 %v1317_v7, %v511_v48 }
 0x4a0   :  { %v1187_v53 = vpop.eup %1186 }
 0x4a1   :  { %246 = vrot.lane.b32.xlu1 %v1187_v53, %s1262_s20 }
 0x513   :  { %v247_v54 = vpop.permute.xlu1 %246 }
 0x514   :  { %v1355_v55 = vmul.f32 %v1185_v45, %v247_v54 }
 0x516   :  { %v279_v56 = vpack.c.bf16 %v1355_v55, %v1355_v55 }
 0x518   :  { %285 = vrot.lane.b32.xlu0 %v279_v56, %s1263_s21 }
 0x58a   :  { %v286_v57 = vpop.permute.xlu0 %285 }
 0x58b   :  { %1103 = vmatmul.mubr.msk.bf16.vlgmr.msra.gmra.mrb[4].mxu0 %vm52_vm2, %v286_v57 }
 0x58c   :  { %1118 = vmatprep.mubr.msk.bf16.mxu0 %vm1261_vm0, %v1260_v1  ;;  %1115 = vmatpush3.bf16.msra.mxu0 %v1164_v40 }
 0x58d   :  { %1116 = vmatprep.subr.bf16.mxu0 %v1260_v1 }
 0x590   :  { %1117 = vmatpush3.bf16.msra.mxu0 %v1165_v41 }
 0x591   :  { %1130 = vmatprep.subr.bf16.mxu0 %v1260_v1 }
 0x65e   :  { %v336_v61 = vpop.f32.mrb[4].mxu0 }
 0x65f   :  { %v342_v62 = vadd.f32 %v336_v61, %v278_v60  ;;  %v1104_v63 = vpop.f32.mrb[5].mxu0 }
 0x660   :  { %v339_v0 = vpop.f32.mrb[6].mxu0 }
 0x661   :  { %1188 = vtanh.f32 %v342_v62  ;;  %v1105_v2 = vpop.f32.mrb[7].mxu0  ;;  %v1032_v4 = vmul.f32 -1.442695, %v342_v62 }
 0x663   :  { %1190 = vpow2.f32 %v1032_v4  ;;  %v1167_v4 = vld [vmem:[%s1571_s1 + $0x8] sm:$0xff]  }
 0x66b   :  { %v1189_v3 = vpop.eup %1188 }
 0x66c   :  { %352 = vrot.lane.b32.xlu1 %v1189_v3, %s1262_s20  ;;  %v1166_v3 = vld [vmem:[%s1571_s1] sm:$0xff]  }
 0x66d   :  { %v1191_v5 = vpop.eup %1190 }
 0x66e   :  { %v346_v6 = vadd.f32 1.0, %v1191_v5 }
 0x670   :  { %1192 = vrcp.f32 %v346_v6 }
 0x67a   :  { %v1193_v8 = vpop.eup %1192 }
 0x67b   :  { %v350_v11 = vmul.f32 %v1193_v8, %v243_v50 }
 0x6de   :  { %v353_v9 = vpop.permute.xlu1 %352 }
 0x6df   :  { %v355_v10 = vmul.f32 %v1193_v8, %v353_v9 }
 0x6e1   :  { %357 = vrot.lane.b32.xlu0 %v355_v10, %s1263_s21 }
 0x753   :  { %v358_v12 = vpop.permute.xlu0 %357 }
 0x754   :  { %v360_v13 = vadd.f32 %v358_v12, %v350_v11  ;;  %v1043_v11 = vld [vmem:[%s1570_s0 + $0x5] sm:$0x1] }
 0x755   :  { %v628_v12 = vunpack.c.l.bf16 %v1043_v11 }
 0x756   :  { %1194 = vtanh.f32 %v360_v13 }
 0x760   :  { %v1195_v16 = vpop.eup %1194 }
 0x761   :  { %363 = vrot.lane.b32.xlu1 %v1195_v16, %s1262_s20 }
 0x7d3   :  { %v364_v17 = vpop.permute.xlu1 %363 }
 0x7d4   :  { %v1378_v18 = vmul.f32 %v1193_v8, %v364_v17 }
 0x7d6   :  { %v396_v19 = vpack.c.bf16 %v1378_v18, %v1378_v18 }
 0x7d8   :  { %402 = vrot.lane.b32.xlu0 %v396_v19, %s1263_s21 }
 0x84a   :  { %v403_v20 = vpop.permute.xlu0 %402 }
 0x84b   :  { %1111 = vmatmul.mubr.msk.bf16.vlgmr.msra.gmra.mrb[4].mxu1 %vm52_vm2, %v403_v20 }
 0x84c   :  { %1126 = vmatprep.mubr.msk.bf16.mxu1 %vm1261_vm0, %v1260_v1  ;;  %1123 = vmatpush3.bf16.msra.mxu1 %v1166_v3 }
 0x84d   :  { %1124 = vmatprep.subr.bf16.mxu1 %v1260_v1 }
 0x850   :  { %1125 = vmatpush3.bf16.msra.mxu1 %v1167_v4 }
 0x851   :  { %1138 = vmatprep.subr.bf16.mxu1 %v1260_v1 }
 0x91e   :  { %v453_v24 = vpop.f32.mrb[4].mxu1 }
 0x91f   :  { %v459_v25 = vadd.f32 %v453_v24, %v395_v23  ;;  %v1112_v26 = vpop.f32.mrb[5].mxu1 }
 0x920   :  { %v456_v27 = vpop.f32.mrb[6].mxu1 }
 0x921   :  { %1196 = vtanh.f32 %v459_v25  ;;  %v1113_v28 = vpop.f32.mrb[7].mxu1  ;;  %v1037_v31 = vmul.f32 -1.442695, %v459_v25 }
 0x923   :  { %1198 = vpow2.f32 %v1037_v31  ;;  %v1168_v31 = vld [vmem:[%s1571_s1] sm:$0xff]  }
 0x92b   :  { %v1197_v29 = vpop.eup %1196 }
 0x92c   :  { %469 = vrot.lane.b32.xlu1 %v1197_v29, %s1262_s20 }
 0x92d   :  { %v1199_v32 = vpop.eup %1198 }
 0x92e   :  { %v463_v33 = vadd.f32 1.0, %v1199_v32  ;;  %v1169_v32 = vld [vmem:[%s1571_s1 + $0x8] sm:$0xff]  }
 0x930   :  { %1200 = vrcp.f32 %v463_v33 }
 0x93a   :  { %v1201_v34 = vpop.eup %1200 }
 0x93b   :  { %v467_v37 = vmul.f32 %v1201_v34, %v360_v13  ;;  %v629_v13 = vadd.f32 %v1317_v7, %v628_v12 }
 0x99e   :  { %v470_v35 = vpop.permute.xlu1 %469 }
 0x99f   :  { %v472_v36 = vmul.f32 %v1201_v34, %v470_v35 }
 0x9a1   :  { %474 = vrot.lane.b32.xlu0 %v472_v36, %s1263_s21 }
 0xa13   :  { %v475_v38 = vpop.permute.xlu0 %474 }
 0xa14   :  { %v477_v39 = vadd.f32 %v475_v38, %v467_v37  ;;  %v1048_v38 = vld [vmem:[%s1570_s0 + $0x6] sm:$0x1] }
 0xa16   :  { %1202 = vtanh.f32 %v477_v39 }
 0xa20   :  { %v1203_v42 = vpop.eup %1202 }
 0xa21   :  { %480 = vrot.lane.b32.xlu1 %v1203_v42, %s1262_s20 }
 0xa93   :  { %v481_v43 = vpop.permute.xlu1 %480 }
 0xa94   :  { %v1401_v44 = vmul.f32 %v1201_v34, %v481_v43 }
 0xa96   :  { %v513_v45 = vpack.c.bf16 %v1401_v44, %v1401_v44 }
 0xa98   :  { %519 = vrot.lane.b32.xlu0 %v513_v45, %s1263_s21 }
 0xb0a   :  { %v520_v46 = vpop.permute.xlu0 %519 }
 0xb0b   :  { %1119 = vmatmul.mubr.msk.bf16.vlgmr.msra.gmra.mrb[8].mxu0 %vm52_vm2, %v520_v46 }
 0xb0c   :  { %1134 = vmatprep.mubr.msk.bf16.mxu0 %vm1261_vm0, %v1260_v1  ;;  %1131 = vmatpush3.bf16.msra.mxu0 %v1168_v31 }
 0xb0d   :  { %1132 = vmatprep.subr.bf16.mxu0 %v1260_v1 }
 0xb10   :  { %1133 = vmatpush3.bf16.msra.mxu0 %v1169_v32 }
 0xbde   :  { %v570_v50 = vpop.f32.mrb[8].mxu0 }
 0xbdf   :  { %v576_v51 = vadd.f32 %v570_v50, %v512_v49  ;;  %v1120_v52 = vpop.f32.mrb[9].mxu0 }
 0xbe0   :  { %v573_v53 = vpop.f32.mrb[10].mxu0 }
 0xbe1   :  { %1204 = vtanh.f32 %v576_v51  ;;  %v1121_v54 = vpop.f32.mrb[11].mxu0  ;;  %v1042_v57 = vmul.f32 -1.442695, %v576_v51 }
 0xbe3   :  { %1206 = vpow2.f32 %v1042_v57 }
 0xbeb   :  { %v1205_v56 = vpop.eup %1204 }
 0xbec   :  { %586 = vrot.lane.b32.xlu1 %v1205_v56, %s1262_s20 }
 0xbed   :  { %v1207_v58 = vpop.eup %1206 }
 0xbee   :  { %v580_v59 = vadd.f32 1.0, %v1207_v58  ;;  %v1170_v58 = vld [vmem:[%s1571_s1] sm:$0xff]  }
 0xbf0   :  { %1208 = vrcp.f32 %v580_v59  ;;  %v1171_v59 = vld [vmem:[%s1571_s1 + $0x8] sm:$0xff]   ;;  %s1267_s1 = smov [#allocation4]  }
 0xbfa   :  { %v1209_v60 = vpop.eup %1208 }
 0xbfb   :  { %v584_v63 = vmul.f32 %v1209_v60, %v477_v39  ;;  %v745_v39 = vunpack.c.l.bf16 %v1048_v38 }
 0xbfd   :  { %v746_v40 = vadd.f32 %v1317_v7, %v745_v39 }
 0xc5e   :  { %v587_v61 = vpop.permute.xlu1 %586 }
 0xc5f   :  { %v589_v62 = vmul.f32 %v1209_v60, %v587_v61 }
 0xc61   :  { %591 = vrot.lane.b32.xlu0 %v589_v62, %s1263_s21 }
 0xcd3   :  { %v592_v0 = vpop.permute.xlu0 %591 }
 0xcd4   :  { %v594_v2 = vadd.f32 %v592_v0, %v584_v63 }
 0xcd6   :  { %1210 = vtanh.f32 %v594_v2 }
 0xce0   :  { %v1211_v5 = vpop.eup %1210 }
 0xce1   :  { %597 = vrot.lane.b32.xlu1 %v1211_v5, %s1262_s20 }
 0xd53   :  { %v598_v6 = vpop.permute.xlu1 %597 }
 0xd54   :  { %v1424_v8 = vmul.f32 %v1209_v60, %v598_v6 }
 0xd56   :  { %v630_v9 = vpack.c.bf16 %v1424_v8, %v1424_v8 }
 0xd58   :  { %636 = vrot.lane.b32.xlu0 %v630_v9, %s1263_s21 }
 0xdca   :  { %v637_v10 = vpop.permute.xlu0 %636 }
 0xdcb   :  { %1127 = vmatmul.mubr.msk.bf16.vlgmr.msra.gmra.mrb[8].mxu1 %vm52_vm2, %v637_v10 }
 0xdcc   :  { %1142 = vmatprep.mubr.msk.bf16.mxu1 %vm1261_vm0, %v1260_v1  ;;  %1139 = vmatpush3.bf16.msra.mxu1 %v1170_v58 }
 0xdcd   :  { %1140 = vmatprep.subr.bf16.mxu1 %v1260_v1 }
 0xdd0   :  { %1141 = vmatpush3.bf16.msra.mxu1 %v1171_v59 }
 0xe9e   :  { %v687_v14 = vpop.f32.mrb[8].mxu1 }
 0xe9f   :  { %v693_v15 = vadd.f32 %v687_v14, %v629_v13  ;;  %v1128_v16 = vpop.f32.mrb[9].mxu1 }
 0xea0   :  { %v690_v17 = vpop.f32.mrb[10].mxu1 }
 0xea1   :  { %1212 = vtanh.f32 %v693_v15  ;;  %v1129_v19 = vpop.f32.mrb[11].mxu1  ;;  %v1047_v21 = vmul.f32 -1.442695, %v693_v15  ;;  %v1264_v15 = vmov 1966171168   ;;  %v136_v17 = vlaneseq }
 0xea2   :  { %v134_v16 = vunpack.c.l.s4 %v1264_v15 }
 0xea3   :  { %1214 = vpow2.f32 %v1047_v21 }
 0xea4   :  { %v135_v19 = vunpack.c.0.s8 %v134_v16 }
 0xeab   :  { %v1213_v20 = vpop.eup %1212 }
 0xeac   :  { %703 = vrot.lane.b32.xlu1 %v1213_v20, %s1262_s20  ;;  %v1476_v20 = vshrl.u32 %v136_v17, 7 }
 0xead   :  { %v1215_v22 = vpop.eup %1214 }
 0xeae   :  { %v697_v23 = vadd.f32 1.0, %v1215_v22 }
 0xeb0   :  { %1216 = vrcp.f32 %v697_v23  ;;  %v1484_v23 = vsub.s32 0, %v1476_v20 }
 0xeba   :  { %v1217_v24 = vpop.eup %1216 }
 0xebb   :  { %v701_v27 = vmul.f32 %v1217_v24, %v594_v2  ;;  %v1053_v2 = vld [vmem:[%s1570_s0 + $0x7] sm:$0x1]  ;;  %s1266_s0 = smov 96  }
 0xebc   :  { %v862_v3 = vunpack.c.l.bf16 %v1053_v2 }
 0xebe   :  { %v863_v4 = vadd.f32 %v1317_v7, %v862_v3  ;;  %v1479_v7 = vsub.s32 %v135_v19, %v1476_v20 }
 0xf1e   :  { %v704_v25 = vpop.permute.xlu1 %703 }
 0xf1f   :  { %v706_v26 = vmul.f32 %v1217_v24, %v704_v25 }
 0xf21   :  { %708 = vrot.lane.b32.xlu0 %v706_v26, %s1263_s21  ;;  %v257_v26 = vrot.slane %v1355_v55, %v1479_v7  ;;  %v608_v55 = vrot.slane %v1424_v8, %v1479_v7 }
 0xf93   :  { %v709_v28 = vpop.permute.xlu0 %708 }
 0xf94   :  { %v711_v29 = vadd.f32 %v709_v28, %v701_v27  ;;  %v374_v28 = vrot.slane %v1378_v18, %v1479_v7 }
 0xf96   :  { %1218 = vtanh.f32 %v711_v29  ;;  %v379_v31 = vrot.slane %v374_v28, %v1484_v23 }
 0xfa0   :  { %v1219_v33 = vpop.eup %1218 }
 0xfa1   :  { %714 = vrot.lane.b32.xlu1 %v1219_v33, %s1262_s20  ;;  %v613_v33 = vrot.slane %v608_v55, %v1484_v23 }
0x1013   :  { %v715_v34 = vpop.permute.xlu1 %714 }
0x1014   :  { %v1446_v35 = vmul.f32 %v1217_v24, %v715_v34  ;;  %v139_v24 = vrot.slane %v1332_v30, %v1479_v7  ;;  %v491_v30 = vrot.slane %v1401_v44, %v1479_v7 }
0x1016   :  { %v747_v36 = vpack.c.bf16 %v1446_v35, %v1446_v35  ;;  %v144_v27 = vrot.slane %v139_v24, %v1484_v23  ;;  %v496_v32 = vrot.slane %v491_v30, %v1484_v23  ;;  %v725_v18 = vrot.slane %v1446_v35, %v1479_v7 }
0x1018   :  { %753 = vrot.lane.b32.xlu0 %v747_v36, %s1263_s21  ;;  %v730_v34 = vrot.slane %v725_v18, %v1484_v23 }
0x108a   :  { %v754_v37 = vpop.permute.xlu0 %753 }
0x108b   :  { %1135 = vmatmul.mubr.msk.bf16.vlgmr.msra.gmra.mrb[12].mxu0 %vm52_vm2, %v754_v37 }
0x115e   :  { %v804_v41 = vpop.f32.mrb[12].mxu0 }
0x115f   :  { %v810_v42 = vadd.f32 %v804_v41, %v746_v40  ;;  %v1136_v43 = vpop.f32.mrb[13].mxu0  ;;  %v140_v40 = vcombine.high %v139_v24, %v139_v24 }
0x1160   :  { %v807_v45 = vpop.f32.mrb[14].mxu0  ;;  %v258_v43 = vcombine.high %v257_v26, %v257_v26 }
0x1161   :  { %1220 = vtanh.f32 %v810_v42  ;;  %v1137_v46 = vpop.f32.mrb[15].mxu0  ;;  %v1052_v48 = vmul.f32 -1.442695, %v810_v42 }
0x1162   :  { %v148_v46 = vrot.slane %v140_v40, %v1484_v23 }
0x1163   :  { %1222 = vpow2.f32 %v1052_v48 }
0x116b   :  { %v1221_v47 = vpop.eup %1220 }
0x116c   :  { %820 = vrot.lane.b32.xlu1 %v1221_v47, %s1262_s20  ;;  %v375_v47 = vcombine.high %v374_v28, %v374_v28 }
0x116d   :  { %v1223_v49 = vpop.eup %1222 }
0x116e   :  { %v814_v50 = vadd.f32 1.0, %v1223_v49  ;;  %v266_v49 = vrot.slane %v258_v43, %v1484_v23 }
0x1170   :  { %1224 = vrcp.f32 %v814_v50  ;;  %v492_v50 = vcombine.high %v491_v30, %v491_v30 }
0x117a   :  { %v1225_v51 = vpop.eup %1224 }
0x117b   :  { %v818_v54 = vmul.f32 %v1225_v51, %v711_v29  ;;  %v262_v29 = vrot.slane %v257_v26, %v1484_v23 }
0x11de   :  { %v821_v52 = vpop.permute.xlu1 %820 }
0x11df   :  { %v823_v53 = vmul.f32 %v1225_v51, %v821_v52  ;;  %v383_v52 = vrot.slane %v375_v47, %v1484_v23 }
0x11e1   :  { %825 = vrot.lane.b32.xlu0 %v823_v53, %s1263_s21  ;;  %v609_v53 = vcombine.high %v608_v55, %v608_v55 }
0x11e3   :  { %v617_v58 = vrot.slane %v609_v53, %v1484_v23 }
0x1253   :  { %v826_v56 = vpop.permute.xlu0 %825 }
0x1254   :  { %v1458_v57 = vadd.f32 %v826_v56, %v818_v54  ;;  %v500_v56 = vrot.slane %v492_v50, %v1484_v23 }
0x1256   :  { %1226 = vtanh.f32 %v1458_v57 }
0x1260   :  { %v1227_v60 = vpop.eup %1226 }
0x1261   :  { %831 = vrot.lane.b32.xlu1 %v1227_v60, %s1262_s20 }
0x12d3   :  { %v832_v61 = vpop.permute.xlu1 %831 }
0x12d4   :  { %v834_v62 = vmul.f32 %v1225_v51, %v832_v61 }
0x12d6   :  { %v864_v63 = vpack.c.bf16 %v834_v62, %v834_v62  ;;  %v842_v44 = vrot.slane %v834_v62, %v1479_v7  ;;  %v1265_v62 = vmov 1983009808  }
0x12d8   :  { %870 = vrot.lane.b32.xlu0 %v864_v63, %s1263_s21  ;;  %v847_v36 = vrot.slane %v842_v44, %v1484_v23  ;;  %v843_v59 = vcombine.high %v842_v44, %v842_v44  ;;  %v978_v63 = vunpack.c.l.s4 %v1265_v62 }
0x12da   :  { %v851_v61 = vrot.slane %v843_v59, %v1484_v23  ;;  %v979_v3 = vunpack.c.0.s8 %v978_v63 }
0x134a   :  { %v871_v0 = vpop.permute.xlu0 %870 }
0x134b   :  { %1143 = vmatmul.mubr.msk.bf16.vlgmr.msra.gmra.mrb[12].mxu1 %vm52_vm2, %v871_v0 }
0x141e   :  { %v921_v1 = vpop.f32.mrb[12].mxu1 }
0x141f   :  { %v927_v5 = vadd.f32 %v921_v1, %v863_v4  ;;  %v1144_v6 = vpop.f32.mrb[13].mxu1 }
0x1420   :  { %v924_v9 = vpop.f32.mrb[14].mxu1 }
0x1421   :  { %1228 = vtanh.f32 %v927_v5  ;;  %v1145_v10 = vpop.f32.mrb[15].mxu1  ;;  %v1057_v12 = vmul.f32 -1.442695, %v927_v5  ;;  %v982_v9 = vsub.s32 %v979_v3, %v1476_v20 }
0x1423   :  { %1230 = vpow2.f32 %v1057_v12 }
0x142b   :  { %v1229_v11 = vpop.eup %1228 }
0x142c   :  { %937 = vrot.lane.b32.xlu1 %v1229_v11, %s1262_s20 }
0x142d   :  { %v1231_v13 = vpop.eup %1230 }
0x142e   :  { %v931_v14 = vadd.f32 1.0, %v1231_v13 }
0x1430   :  { %1232 = vrcp.f32 %v931_v14 }
0x143a   :  { %v1481_v21 = vpop.eup %1232 }
0x143b   :  { %v935_v8 = vmul.f32 %v1481_v21, %v1458_v57  ;;  %v726_v57 = vcombine.high %v725_v18, %v725_v18 }
0x143d   :  { %v734_v60 = vrot.slane %v726_v57, %v1484_v23 }
0x149e   :  { %v938_v22 = vpop.permute.xlu1 %937 }
0x149f   :  { %v940_v25 = vmul.f32 %v1481_v21, %v938_v22 }
0x14a1   :  { %942 = vrot.lane.b32.xlu0 %v940_v25, %s1263_s21 }
0x14a5   :  { %149 = vrot.lane.b32.xlu0 %v144_v27, %s1263_s21 }
0x14a9   :  { %267 = vrot.lane.b32.xlu0 %v262_v29, %s1263_s21 }
0x14ad   :  { %384 = vrot.lane.b32.xlu0 %v379_v31, %s1263_s21 }
0x14b1   :  { %501 = vrot.lane.b32.xlu0 %v496_v32, %s1263_s21 }
0x14b5   :  { %618 = vrot.lane.b32.xlu0 %v613_v33, %s1263_s21 }
0x14b9   :  { %735 = vrot.lane.b32.xlu0 %v730_v34, %s1263_s21 }
0x14bd   :  { %852 = vrot.lane.b32.xlu0 %v847_v36, %s1263_s21 }
0x1513   :  { %v943_v37 = vpop.permute.xlu0 %942 }
0x1514   :  { %v945_v38 = vadd.f32 %v943_v37, %v935_v8 }
0x1516   :  { %1234 = vtanh.f32 %v945_v38  ;;  %v996_v13 = vrot.slane %v945_v38, %v982_v9 }
0x1517   :  { %v150_v35 = vpop.permute.xlu0 %149 }
0x1518   :  { %156 = vst.msk [vmem:[#allocation4] sm:$0x1] %vm155_vm3, %v150_v35 }
0x151b   :  { %v268_v39 = vpop.permute.xlu0 %267 }
0x151c   :  { %273 = vst.msk [vmem:[#allocation4 + $0x1] sm:$0x1] %vm155_vm3, %v268_v39 }
0x151f   :  { %v385_v41 = vpop.permute.xlu0 %384 }
0x1520   :  { %v1235_v42 = vpop.eup %1234  ;;  %390 = vst.msk [vmem:[#allocation4 + $0x2] sm:$0x1] %vm155_vm3, %v385_v41 }
0x1521   :  { %948 = vrot.lane.b32.xlu1 %v1235_v42, %s1262_s20  ;;  %s1006_s20 = sshll.u32 %s1267_s1, 4  ;;  %s1007_s20 = int_to_ptr.vmem [resolvable:$true] %s1006_s20 }
0x1522   :  { %p1241_p1 = scmp.lt.s32.totalorder %s1007_s20, %s1007_s20 }
0x1523   :  { %v502_v45 = vpop.permute.xlu0 %501 }
0x1524   :  { %507 = vst.msk [vmem:[#allocation4 + $0x3] sm:$0x1] %vm155_vm3, %v502_v45 }
0x1525   :  { %151 = vrot.lane.b32.xlu1 %v148_v46, %s1263_s21 }
0x1527   :  { %v619_v48 = vpop.permute.xlu0 %618 }
0x1528   :  { %624 = vst.msk [vmem:[#allocation4 + $0x4] sm:$0x1] %vm155_vm3, %v619_v48 }
0x1529   :  { %269 = vrot.lane.b32.xlu1 %v266_v49, %s1263_s21 }
0x152b   :  { %v736_v51 = vpop.permute.xlu0 %735 }
0x152c   :  { %741 = vst.msk [vmem:[#allocation4 + $0x5] sm:$0x1] %vm155_vm3, %v736_v51 }
0x152d   :  { %386 = vrot.lane.b32.xlu1 %v383_v52, %s1263_s21 }
0x152f   :  { %v853_v54 = vpop.permute.xlu0 %852 }
0x1530   :  { %858 = vst.msk [vmem:[#allocation4 + $0x6] sm:$0x1] %vm155_vm3, %v853_v54 }
0x1531   :  { %503 = vrot.lane.b32.xlu1 %v500_v56, %s1263_s21 }
0x1535   :  { %620 = vrot.lane.b32.xlu1 %v617_v58, %s1263_s21 }
0x1539   :  { %737 = vrot.lane.b32.xlu1 %v734_v60, %s1263_s21 }
0x153d   :  { %854 = vrot.lane.b32.xlu1 %v851_v61, %s1263_s21 }
0x1593   :  { %v949_v0 = vpop.permute.xlu1 %948 }
0x1594   :  { %v951_v2 = vmul.f32 %v1481_v21, %v949_v0 }
0x1596   :  { %v959_v4 = vrot.slane %v951_v2, %v1479_v7  ;;  %v983_v12 = vrot.slane %v951_v2, %v982_v9 }
0x1597   :  { %v152_v1 = vpop.permute.xlu1 %151 }
0x1598   :  { %v960_v5 = vcombine.high %v959_v4, %v959_v4  ;;  %157 = vst.msk [vmem:[#allocation4 + $0x8] sm:$0x1] %vm155_vm3, %v152_v1  ;;  %v964_v6 = vrot.slane %v959_v4, %v1484_v23 }
0x159a   :  { %969 = vrot.lane.b32.xlu0 %v964_v6, %s1263_s21  ;;  %v968_v10 = vrot.slane %v960_v5, %v1484_v23 }
0x159b   :  { %v270_v11 = vpop.permute.xlu1 %269 }
0x159c   :  { %274 = vst.msk [vmem:[#allocation4 + $0x9] sm:$0x1] %vm155_vm3, %v270_v11  ;;  %971 = vrot.lane.b32.xlu1 %v968_v10, %s1263_s21 }
0x159e   :  { %984 = vrot.lane.b32.xlu0 %v983_v12, %s1263_s21  ;;  %s1236_s21 = scalar_lea.vmem %s1007_s20, 256 }
0x159f   :  { %v387_v14 = vpop.permute.xlu1 %386  ;;  %p1237_p0 = scmp.ne.s32.totalorder %s1007_s20, %s1236_s21  ;;  %p1242_p2 = scmp.lt.s32.totalorder %s1236_s21, %s1236_s21 }
0x15a0   :  { %391 = vst.msk [vmem:[#allocation4 + $0xa] sm:$0x1] %vm155_vm3, %v387_v14  ;;  %997 = vrot.lane.b32.xlu1 %v996_v13, %s1266_s0 }
0x15a1   :  { %p1243_p3 = por %p1242_p2, %p1241_p1 }
0x15a3   :  { %v504_v15 = vpop.permute.xlu1 %503  ;;  %p1244_p4 = pnand %p1243_p3, %p1237_p0 }
0x15a4   :  { %508 = vst.msk [vmem:[#allocation4 + $0xb] sm:$0x1] %vm155_vm3, %v504_v15 }
0x15a7   :  { %v621_v16 = vpop.permute.xlu1 %620 }
0x15a8   :  { %625 = vst.msk [vmem:[#allocation4 + $0xc] sm:$0x1] %vm155_vm3, %v621_v16 }
0x15ab   :  { %v738_v17 = vpop.permute.xlu1 %737 }
0x15ac   :  { %742 = vst.msk [vmem:[#allocation4 + $0xd] sm:$0x1] %vm155_vm3, %v738_v17 }
0x15af   :  { %v855_v19 = vpop.permute.xlu1 %854 }
0x15b0   :  { %859 = vst.msk [vmem:[#allocation4 + $0xe] sm:$0x1] %vm155_vm3, %v855_v19 }
0x160c   :  { %v970_v20 = vpop.permute.xlu0 %969 }
0x160d   :  { %975 = vst.msk [vmem:[#allocation4 + $0x7] sm:$0x1] %vm155_vm3, %v970_v20 }
0x160e   :  { %v972_v7 = vpop.permute.xlu1 %971 }
0x160f   :  { %976 = vst.msk [vmem:[#allocation4 + $0xf] sm:$0x1] %vm155_vm3, %v972_v7 }
0x1610   :  { %v985_v21 = vpop.permute.xlu0 %984 }
0x1611   :  { %1247 = shalt.err (!%p1244_p4)
}
0x1612   :  { %s1248_s12 = scalar_lea.hbm %s1573_s3, 256 }
0x1613   :  { %p1249_p5 = scmp.ne.s32.totalorder %s1573_s3, %s1248_s12  ;;  %p1252_p6 = scmp.lt.u32.totalorder %s1248_s12, %s1573_s3 }
0x1615   :  { %p1254_p7 = pnand %p1252_p6, %p1249_p5 }
0x1617   :  { %1257 = shalt.err (!%p1254_p7)
}
0x1618   :  { %s1268_s17 = smov 128   ;;  %s1269_s18 = smov 8   ;;  %988 = vst.msk [vmem:[#allocation2] sm:$0x3] %vm20_vm1, %v985_v21  ;;  %v998_v22 = vpop.permute.xlu1 %997 }
0x1619   :  { %1012 = dma.vmem_to_hbm [thread:$0]  %s1007_s20, 256, %s1573_s3, [#allocation5], %s1268_s17, %s1268_s17, %s1269_s18   ;;  %1000 = vst.msk [vmem:[#allocation3] sm:$0x3] %vm20_vm1, %v998_v22 }
0x161a   :  { %1258 = dma.done.wait [#allocation5], 256  }
0x161b   :  { %1259 = vsyncadd [#allocation5], 4294967040 }
0x161c   :  { %1016 = vsyncpa [#allocation5], 1 }

</bundles_post_ra>
